<compile_context>
chip_gen: v7x
topology: tpu7x:2x2x1
jax: 0.10.0
libtpu: 0.0.40
codegen_flags: <defaults>
</compile_context>

<pallas_src>
import jax
import jax.numpy as jnp
from jax.experimental import pallas as pl
from jax.experimental.pallas import tpu as pltpu


def _round_up(v, m):
    return -(-v // m) * m


# ------------------------------ Fused kernel -------------------------------

def _tinyvgg_kernel(x_ref, w1a, b1a, w1b, b1b, w2a, b2a, w2b, b2b, fcw, fcb,
                    o_ref, s1a, s1b, sp1, s2a, s2b):
    """Whole TinyVGG forward for one batch element, fully VMEM resident.

    x_ref : (1, H, Cin_p, W)          input image, (H, C, W) layout
    w*    : (Cout, 9*Cin) tap-major   conv weights, tap = dy*3 + dx
    b*    : (Cout, 1)                 conv biases
    fcw   : (out, 2*Hp, C, 2*Wp)      FC weights with pool-decimation folded in
    fcb   : (1, out)
    o_ref : (1, 1, out)               logits for this image
    s*    : VMEM scratch activations in (H, C, W) layout
    """

    def conv3x3_relu(load_row, w_ref, b_ref, out_ref):
        ho, _, wo = out_ref.shape

        def body(h, carry):
            taps = []
            for dy in range(3):
                row = load_row(h + dy)                  # (cin, wo + 2)
                for dx in range(3):
                    taps.append(row[:, dx:dx + wo])     # (cin, wo)
            patch = jnp.concatenate(taps, axis=0)       # (9*cin, wo)  im2col
            y = jnp.dot(w_ref[...], patch,              # one MXU dot per row
                        preferred_element_type=jnp.float32)
            out_ref[h] = jnp.maximum(y + b_ref[...], 0.0)
            return carry

        jax.lax.fori_loop(0, ho, body, 0)

    def pool2x2_s1(in_ref):
        x = in_ref[...]                                  # (h, c, w)
        hm = jnp.maximum(x[:-1], x[1:])                  # H pair-max (untiled axis)
        return jnp.maximum(hm[:, :, :-1], hm[:, :, 1:])  # W pair-max (lane shift)

    # conv_block_1: Conv-ReLU, Conv-ReLU, MaxPool2d(2, stride=1)
    conv3x3_relu(lambda r: x_ref[0, r], w1a, b1a, s1a)
    conv3x3_relu(lambda r: s1a[r], w1b, b1b, s1b)
    sp1[...] = pool2x2_s1(s1b)

    # conv_block_2: Conv-ReLU, Conv-ReLU, MaxPool2d(2, stride=2)
    conv3x3_relu(lambda r: sp1[r], w2a, b2a, s2a)
    conv3x3_relu(lambda r: s2a[r], w2b, b2b, s2b)
    m = pool2x2_s1(s2b)          # stride-1 2x2 maxima; the stride-2 decimation
    #                              is folded into fcw (zeros at odd positions)

    # classifier: Flatten + Linear, done as out_dim VPU dot-reductions
    out_dim = o_ref.shape[2]
    parts = []
    for o in range(out_dim):
        prod = m * fcw[o]                                  # (hm, c, wm)
        s = jnp.sum(prod, axis=0)                          # (c, wm) add slabs
        col = jnp.sum(s, axis=1, keepdims=True)            # (c, 1)  lane reduce
        parts.append(jnp.sum(col, axis=0, keepdims=True))  # (1, 1)  sublane red.
    logits = jnp.concatenate(parts, axis=1) + fcb[...]     # (1, out_dim)
    o_ref[0] = logits.astype(o_ref.dtype)


# ------------------------- Weight prep (one time) ---------------------------

def prepare_kernel_params(params):
    """Re-layout torch-style weights for the fused kernel (done once)."""
    def conv_mat(w, cin_pad):
        cout, cin, kh, kw = w.shape
        if cin_pad > cin:
            w = jnp.pad(w, ((0, 0), (0, cin_pad - cin), (0, 0), (0, 0)))
        # w_mat[o, (dy*3 + dx)*cin_pad + c] = w[o, c, dy, dx]
        return jnp.transpose(w, (0, 2, 3, 1)).reshape(cout, kh * kw * cin_pad)

    hidden, cin = params["c1a_w"].shape[0], params["c1a_w"].shape[1]
    cin_p = _round_up(cin, 8)
    out_dim, feat = params["fc_w"].shape
    hp = 27                                   # hard-coded by Linear(hidden*27*27)
    assert feat == hidden * hp * hp

    # Fold MaxPool2d(2,2) stride-2 decimation + torch NCHW flatten order into
    # the FC weights, laid out in the kernel's (H, C, W) order.
    w4 = params["fc_w"].reshape(out_dim, hidden, hp, hp)        # [o, c, i, j]
    fcw = jnp.zeros((out_dim, 2 * hp, hidden, 2 * hp), jnp.float32)
    fcw = fcw.at[:, ::2, :, ::2].set(jnp.transpose(w4, (0, 2, 1, 3)))

    return {
        "w1a": conv_mat(params["c1a_w"], cin_p),
        "b1a": params["c1a_b"].reshape(hidden, 1),
        "w1b": conv_mat(params["c1b_w"], hidden),
        "b1b": params["c1b_b"].reshape(hidden, 1),
        "w2a": conv_mat(params["c2a_w"], hidden),
        "b2a": params["c2a_b"].reshape(hidden, 1),
        "w2b": conv_mat(params["c2b_w"], hidden),
        "b2b": params["c2b_b"].reshape(hidden, 1),
        "fcw": fcw,
        "fcb": params["fc_b"].reshape(1, out_dim),
    }


# ------------------------------ Forward pass -------------------------------

def tiny_vgg_forward(kp, x_nchw):
    n, cin, hh, ww = x_nchw.shape
    hidden = kp["w1a"].shape[0]
    cin_p = kp["w1a"].shape[1] // 9
    out_dim = kp["fcb"].shape[1]

    # NCHW -> (N, H, C, W); pad C up to a sublane tile (zeros x zero weights).
    x = jnp.transpose(x_nchw, (0, 2, 1, 3))
    if cin_p > cin:
        x = jnp.pad(x, ((0, 0), (0, 0), (0, cin_p - cin), (0, 0)))

    h1a, w1a_ = hh - 2, ww - 2
    h1b, w1b_ = h1a - 2, w1a_ - 2
    hp1, wp1 = h1b - 1, w1b_ - 1
    h2a, w2a_ = hp1 - 2, wp1 - 2
    h2b, w2b_ = h2a - 2, w2a_ - 2
    hm, wm = h2b - 1, w2b_ - 1
    assert kp["fcw"].shape == (out_dim, hm, hidden, wm)

    def full(a):
        return pl.BlockSpec(a.shape, lambda b, nd=a.ndim: (0,) * nd)

    out = pl.pallas_call(
        _tinyvgg_kernel,
        out_shape=jax.ShapeDtypeStruct((n, 1, out_dim), jnp.float32),
        grid_spec=pltpu.PrefetchScalarGridSpec(
            num_scalar_prefetch=0,
            grid=(n,),
            in_specs=[
                pl.BlockSpec((1, hh, cin_p, ww), lambda b: (b, 0, 0, 0)),
                full(kp["w1a"]), full(kp["b1a"]),
                full(kp["w1b"]), full(kp["b1b"]),
                full(kp["w2a"]), full(kp["b2a"]),
                full(kp["w2b"]), full(kp["b2b"]),
                full(kp["fcw"]), full(kp["fcb"]),
            ],
            out_specs=pl.BlockSpec((1, 1, out_dim), lambda b: (b, 0, 0)),
            scratch_shapes=[
                pltpu.VMEM((h1a, hidden, w1a_), jnp.float32),
                pltpu.VMEM((h1b, hidden, w1b_), jnp.float32),
                pltpu.VMEM((hp1, hidden, wp1), jnp.float32),
                pltpu.VMEM((h2a, hidden, w2a_), jnp.float32),
                pltpu.VMEM((h2b, hidden, w2b_), jnp.float32),
            ],
        ),
        compiler_params=pltpu.CompilerParams(
            dimension_semantics=("parallel",)),
    )(x, kp["w1a"], kp["b1a"], kp["w1b"], kp["b1b"],
      kp["w2a"], kp["b2a"], kp["w2b"], kp["b2b"], kp["fcw"], kp["fcb"])
    return out.reshape(n, out_dim)


# --------------------------- Params & reference ----------------------------

def init_params(key, input_shape=3, hidden_units=8, output_shape=2):
    ks = jax.random.split(key, 10)

    def conv_w(k, cout, cin):
        return (jax.random.normal(k, (cout, cin, 3, 3), jnp.float32)
                / jnp.sqrt(cin * 9.0))

    feat = hidden_units * 27 * 27
    return {
        "c1a_w": conv_w(ks[0], hidden_units, input_shape),
        "c1a_b": 0.01 * jax.random.normal(ks[1], (hidden_units,), jnp.float32),
        "c1b_w": conv_w(ks[2], hidden_units, hidden_units),
        "c1b_b": 0.01 * jax.random.normal(ks[3], (hidden_units,), jnp.float32),
        "c2a_w": conv_w(ks[4], hidden_units, hidden_units),
        "c2a_b": 0.01 * jax.random.normal(ks[5], (hidden_units,), jnp.float32),
        "c2b_w": conv_w(ks[6], hidden_units, hidden_units),
        "c2b_b": 0.01 * jax.random.normal(ks[7], (hidden_units,), jnp.float32),
        "fc_w": (jax.random.normal(ks[8], (output_shape, feat), jnp.float32)
                 / jnp.sqrt(float(feat))),
        "fc_b": 0.01 * jax.random.normal(ks[9], (output_shape,), jnp.float32),
    }


def reference_forward(params, x):
    """Pure-XLA reference with exact PyTorch (NCHW) semantics."""
    def conv(x, w, b):
        y = jax.lax.conv_general_dilated(
            x, w, window_strides=(1, 1), padding="VALID",
            dimension_numbers=("NCHW", "OIHW", "NCHW"))
        return jax.nn.relu(y + b.reshape(1, -1, 1, 1))

    def maxpool(x, stride):
        return jax.lax.reduce_window(
            x, -jnp.inf, jax.lax.max,
            window_dimensions=(1, 1, 2, 2),
            window_strides=(1, 1, stride, stride),
            padding="VALID")

    x = conv(x, params["c1a_w"], params["c1a_b"])
    x = conv(x, params["c1b_w"], params["c1b_b"])
    x = maxpool(x, 1)
    x = conv(x, params["c2a_w"], params["c2a_b"])
    x = conv(x, params["c2b_w"], params["c2b_b"])
    x = maxpool(x, 2)
    x = x.reshape(x.shape[0], -1)
    return x @ params["fc_w"].T + params["fc_b"]


# ----------------------------------- Main -----------------------------------

if __name__ == "__main__":
    key = jax.random.PRNGKey(0)
    k_params, k_x = jax.random.split(key)
    params = init_params(k_params, input_shape=3, hidden_units=8, output_shape=2)
    x = jax.random.normal(k_x, (2, 3, 64, 64), jnp.float32)  # NCHW like PyTorch

    kparams = prepare_kernel_params(params)      # one-time weight re-layout
    fwd = jax.jit(tiny_vgg_forward)
    out = jax.block_until_ready(fwd(kparams, x))
    assert out.shape == (2, 2), out.shape

    ref = jax.block_until_ready(reference_forward(params, x))
    if not bool(jnp.allclose(out, ref, rtol=2e-3, atol=2e-3)):
        raise SystemExit("Pallas output does not match reference")

    print("KERNEL_OK")
</pallas_src>

<mosaic_0001>
module attributes {stable_mosaic.version = 11 : i64} {
  func.func @_tinyvgg_kernel(%arg0: i32, %arg1: memref<1x64x8x64xf32, #tpu.memory_space<vmem>>, %arg2: memref<8x72xf32, #tpu.memory_space<vmem>>, %arg3: memref<8x1xf32, #tpu.memory_space<vmem>>, %arg4: memref<8x72xf32, #tpu.memory_space<vmem>>, %arg5: memref<8x1xf32, #tpu.memory_space<vmem>>, %arg6: memref<8x72xf32, #tpu.memory_space<vmem>>, %arg7: memref<8x1xf32, #tpu.memory_space<vmem>>, %arg8: memref<8x72xf32, #tpu.memory_space<vmem>>, %arg9: memref<8x1xf32, #tpu.memory_space<vmem>>, %arg10: memref<2x54x8x54xf32, #tpu.memory_space<vmem>>, %arg11: memref<1x2xf32, #tpu.memory_space<vmem>>, %arg12: memref<1x1x2xf32, #tpu.memory_space<vmem>>, %arg13: memref<62x8x62xf32, #tpu.memory_space<vmem>>, %arg14: memref<60x8x60xf32, #tpu.memory_space<vmem>>, %arg15: memref<59x8x59xf32, #tpu.memory_space<vmem>>, %arg16: memref<57x8x57xf32, #tpu.memory_space<vmem>>, %arg17: memref<55x8x55xf32, #tpu.memory_space<vmem>>) attributes {dimension_semantics = [#tpu.dimension_semantics<parallel>], iteration_bounds = array<i64: 2>, scalar_prefetch = 0 : i64, scratch_operands = 5 : i64, tpu.core_type = #tpu.core_type<tc>, window_params = [{transform_indices = @transform_0, window_bounds = array<i64: 1, 64, 8, 64>}, {pipeline_mode = #tpu.pipeline_mode<synchronous>, transform_indices = @transform_1, window_bounds = array<i64: 8, 72>}, {pipeline_mode = #tpu.pipeline_mode<synchronous>, transform_indices = @transform_2, window_bounds = array<i64: 8, 1>}, {pipeline_mode = #tpu.pipeline_mode<synchronous>, transform_indices = @transform_3, window_bounds = array<i64: 8, 72>}, {pipeline_mode = #tpu.pipeline_mode<synchronous>, transform_indices = @transform_4, window_bounds = array<i64: 8, 1>}, {pipeline_mode = #tpu.pipeline_mode<synchronous>, transform_indices = @transform_5, window_bounds = array<i64: 8, 72>}, {pipeline_mode = #tpu.pipeline_mode<synchronous>, transform_indices = @transform_6, window_bounds = array<i64: 8, 1>}, {pipeline_mode = #tpu.pipeline_mode<synchronous>, transform_indices = @transform_7, window_bounds = array<i64: 8, 72>}, {pipeline_mode = #tpu.pipeline_mode<synchronous>, transform_indices = @transform_8, window_bounds = array<i64: 8, 1>}, {pipeline_mode = #tpu.pipeline_mode<synchronous>, transform_indices = @transform_9, window_bounds = array<i64: 2, 54, 8, 54>}, {pipeline_mode = #tpu.pipeline_mode<synchronous>, transform_indices = @transform_10, window_bounds = array<i64: 1, 2>}, {transform_indices = @transform_11, window_bounds = array<i64: 1, 1, 2>}]} {
    %c0_i32 = arith.constant 0 : i32
    %c62_i32 = arith.constant 62 : i32
    %0 = arith.addi %c0_i32, %c62_i32 : i32
    %c1_i32 = arith.constant 1 : i32
    scf.for %arg18 = %c0_i32 to %0 step %c1_i32  : i32 {
      %c0_i32_35 = arith.constant 0 : i32
      %41 = arith.addi %arg18, %c0_i32_35 : i32
      %c0_36 = arith.constant 0 : index
      %42 = arith.index_cast %41 : i32 to index
      %c0_37 = arith.constant 0 : index
      %c0_38 = arith.constant 0 : index
      %43 = vector.load %arg1[%c0_36, %42, %c0_37, %c0_38] : memref<1x64x8x64xf32, #tpu.memory_space<vmem>>, vector<1x1x8x64xf32>
      %44 = vector.shape_cast %43 : vector<1x1x8x64xf32> to vector<8x64xf32>
      %45 = vector.extract_strided_slice %44 {offsets = [0, 0], sizes = [8, 62], strides = [1, 1]} : vector<8x64xf32> to vector<8x62xf32>
      %46 = vector.extract_strided_slice %44 {offsets = [0, 1], sizes = [8, 62], strides = [1, 1]} : vector<8x64xf32> to vector<8x62xf32>
      %47 = vector.extract_strided_slice %44 {offsets = [0, 2], sizes = [8, 62], strides = [1, 1]} : vector<8x64xf32> to vector<8x62xf32>
      %c1_i32_39 = arith.constant 1 : i32
      %48 = arith.addi %arg18, %c1_i32_39 : i32
      %c0_40 = arith.constant 0 : index
      %49 = arith.index_cast %48 : i32 to index
      %c0_41 = arith.constant 0 : index
      %c0_42 = arith.constant 0 : index
      %50 = vector.load %arg1[%c0_40, %49, %c0_41, %c0_42] : memref<1x64x8x64xf32, #tpu.memory_space<vmem>>, vector<1x1x8x64xf32>
      %51 = vector.shape_cast %50 : vector<1x1x8x64xf32> to vector<8x64xf32>
      %52 = vector.extract_strided_slice %51 {offsets = [0, 0], sizes = [8, 62], strides = [1, 1]} : vector<8x64xf32> to vector<8x62xf32>
      %53 = vector.extract_strided_slice %51 {offsets = [0, 1], sizes = [8, 62], strides = [1, 1]} : vector<8x64xf32> to vector<8x62xf32>
      %54 = vector.extract_strided_slice %51 {offsets = [0, 2], sizes = [8, 62], strides = [1, 1]} : vector<8x64xf32> to vector<8x62xf32>
      %c2_i32 = arith.constant 2 : i32
      %55 = arith.addi %arg18, %c2_i32 : i32
      %c0_43 = arith.constant 0 : index
      %56 = arith.index_cast %55 : i32 to index
      %c0_44 = arith.constant 0 : index
      %c0_45 = arith.constant 0 : index
      %57 = vector.load %arg1[%c0_43, %56, %c0_44, %c0_45] : memref<1x64x8x64xf32, #tpu.memory_space<vmem>>, vector<1x1x8x64xf32>
      %58 = vector.shape_cast %57 : vector<1x1x8x64xf32> to vector<8x64xf32>
      %59 = vector.extract_strided_slice %58 {offsets = [0, 0], sizes = [8, 62], strides = [1, 1]} : vector<8x64xf32> to vector<8x62xf32>
      %60 = vector.extract_strided_slice %58 {offsets = [0, 1], sizes = [8, 62], strides = [1, 1]} : vector<8x64xf32> to vector<8x62xf32>
      %61 = vector.extract_strided_slice %58 {offsets = [0, 2], sizes = [8, 62], strides = [1, 1]} : vector<8x64xf32> to vector<8x62xf32>
      %62 = tpu.concatenate %45, %46, %47, %52, %53, %54, %59, %60, %61 in 0 : vector<8x62xf32>, vector<8x62xf32>, vector<8x62xf32>, vector<8x62xf32>, vector<8x62xf32>, vector<8x62xf32>, vector<8x62xf32>, vector<8x62xf32>, vector<8x62xf32> -> vector<72x62xf32>
      %c0_46 = arith.constant 0 : index
      %c0_47 = arith.constant 0 : index
      %63 = vector.load %arg2[%c0_46, %c0_47] : memref<8x72xf32, #tpu.memory_space<vmem>>, vector<8x72xf32>
      %cst_48 = arith.constant dense<0.000000e+00> : vector<8x62xf32>
      %64 = tpu.matmul %63, %62, %cst_48 {dimension_numbers = #tpu.dot_dimension_numbers<[1], [0], [0], [1], [0, 0, 1, 1], [], []>} : vector<8x72xf32>, vector<72x62xf32>, vector<8x62xf32> -> vector<8x62xf32>
      %c0_49 = arith.constant 0 : index
      %c0_50 = arith.constant 0 : index
      %65 = vector.load %arg3[%c0_49, %c0_50] : memref<8x1xf32, #tpu.memory_space<vmem>>, vector<8x1xf32>
      %66 = vector.broadcast %65 : vector<8x1xf32> to vector<8x62xf32>
      %67 = arith.addf %64, %66 : vector<8x62xf32>
      %cst_51 = arith.constant 0.000000e+00 : f32
      %68 = vector.broadcast %cst_51 : f32 to vector<8x62xf32>
      %69 = arith.maximumf %67, %68 : vector<8x62xf32>
      %70 = arith.index_cast %arg18 : i32 to index
      %c0_52 = arith.constant 0 : index
      %c0_53 = arith.constant 0 : index
      %71 = vector.load %arg13[%70, %c0_52, %c0_53] : memref<62x8x62xf32, #tpu.memory_space<vmem>>, vector<1x8x62xf32>
      %72 = vector.shape_cast %71 : vector<1x8x62xf32> to vector<8x62xf32>
      %73 = vector.shape_cast %69 : vector<8x62xf32> to vector<1x8x62xf32>
      tpu.vector_store %arg13[%70, %c0_52, %c0_53], %73 {strides = array<i32>} : memref<62x8x62xf32, #tpu.memory_space<vmem>>, vector<1x8x62xf32>,
    }
    %c62_i32_0 = arith.constant 62 : i32
    %c0_i32_1 = arith.constant 0 : i32
    %c60_i32 = arith.constant 60 : i32
    %1 = arith.addi %c0_i32_1, %c60_i32 : i32
    %c1_i32_2 = arith.constant 1 : i32
    scf.for %arg18 = %c0_i32_1 to %1 step %c1_i32_2  : i32 {
      %c0_i32_35 = arith.constant 0 : i32
      %41 = arith.addi %arg18, %c0_i32_35 : i32
      %42 = arith.index_cast %41 : i32 to index
      %c0_36 = arith.constant 0 : index
      %c0_37 = arith.constant 0 : index
      %43 = vector.load %arg13[%42, %c0_36, %c0_37] : memref<62x8x62xf32, #tpu.memory_space<vmem>>, vector<1x8x62xf32>
      %44 = vector.shape_cast %43 : vector<1x8x62xf32> to vector<8x62xf32>
      %45 = vector.extract_strided_slice %44 {offsets = [0, 0], sizes = [8, 60], strides = [1, 1]} : vector<8x62xf32> to vector<8x60xf32>
      %46 = vector.extract_strided_slice %44 {offsets = [0, 1], sizes = [8, 60], strides = [1, 1]} : vector<8x62xf32> to vector<8x60xf32>
      %47 = vector.extract_strided_slice %44 {offsets = [0, 2], sizes = [8, 60], strides = [1, 1]} : vector<8x62xf32> to vector<8x60xf32>
      %c1_i32_38 = arith.constant 1 : i32
      %48 = arith.addi %arg18, %c1_i32_38 : i32
      %49 = arith.index_cast %48 : i32 to index
      %c0_39 = arith.constant 0 : index
      %c0_40 = arith.constant 0 : index
      %50 = vector.load %arg13[%49, %c0_39, %c0_40] : memref<62x8x62xf32, #tpu.memory_space<vmem>>, vector<1x8x62xf32>
      %51 = vector.shape_cast %50 : vector<1x8x62xf32> to vector<8x62xf32>
      %52 = vector.extract_strided_slice %51 {offsets = [0, 0], sizes = [8, 60], strides = [1, 1]} : vector<8x62xf32> to vector<8x60xf32>
      %53 = vector.extract_strided_slice %51 {offsets = [0, 1], sizes = [8, 60], strides = [1, 1]} : vector<8x62xf32> to vector<8x60xf32>
      %54 = vector.extract_strided_slice %51 {offsets = [0, 2], sizes = [8, 60], strides = [1, 1]} : vector<8x62xf32> to vector<8x60xf32>
      %c2_i32 = arith.constant 2 : i32
      %55 = arith.addi %arg18, %c2_i32 : i32
      %56 = arith.index_cast %55 : i32 to index
      %c0_41 = arith.constant 0 : index
      %c0_42 = arith.constant 0 : index
      %57 = vector.load %arg13[%56, %c0_41, %c0_42] : memref<62x8x62xf32, #tpu.memory_space<vmem>>, vector<1x8x62xf32>
      %58 = vector.shape_cast %57 : vector<1x8x62xf32> to vector<8x62xf32>
      %59 = vector.extract_strided_slice %58 {offsets = [0, 0], sizes = [8, 60], strides = [1, 1]} : vector<8x62xf32> to vector<8x60xf32>
      %60 = vector.extract_strided_slice %58 {offsets = [0, 1], sizes = [8, 60], strides = [1, 1]} : vector<8x62xf32> to vector<8x60xf32>
      %61 = vector.extract_strided_slice %58 {offsets = [0, 2], sizes = [8, 60], strides = [1, 1]} : vector<8x62xf32> to vector<8x60xf32>
      %62 = tpu.concatenate %45, %46, %47, %52, %53, %54, %59, %60, %61 in 0 : vector<8x60xf32>, vector<8x60xf32>, vector<8x60xf32>, vector<8x60xf32>, vector<8x60xf32>, vector<8x60xf32>, vector<8x60xf32>, vector<8x60xf32>, vector<8x60xf32> -> vector<72x60xf32>
      %c0_43 = arith.constant 0 : index
      %c0_44 = arith.constant 0 : index
      %63 = vector.load %arg4[%c0_43, %c0_44] : memref<8x72xf32, #tpu.memory_space<vmem>>, vector<8x72xf32>
      %cst_45 = arith.constant dense<0.000000e+00> : vector<8x60xf32>
      %64 = tpu.matmul %63, %62, %cst_45 {dimension_numbers = #tpu.dot_dimension_numbers<[1], [0], [0], [1], [0, 0, 1, 1], [], []>} : vector<8x72xf32>, vector<72x60xf32>, vector<8x60xf32> -> vector<8x60xf32>
      %c0_46 = arith.constant 0 : index
      %c0_47 = arith.constant 0 : index
      %65 = vector.load %arg5[%c0_46, %c0_47] : memref<8x1xf32, #tpu.memory_space<vmem>>, vector<8x1xf32>
      %66 = vector.broadcast %65 : vector<8x1xf32> to vector<8x60xf32>
      %67 = arith.addf %64, %66 : vector<8x60xf32>
      %cst_48 = arith.constant 0.000000e+00 : f32
      %68 = vector.broadcast %cst_48 : f32 to vector<8x60xf32>
      %69 = arith.maximumf %67, %68 : vector<8x60xf32>
      %70 = arith.index_cast %arg18 : i32 to index
      %c0_49 = arith.constant 0 : index
      %c0_50 = arith.constant 0 : index
      %71 = vector.load %arg14[%70, %c0_49, %c0_50] : memref<60x8x60xf32, #tpu.memory_space<vmem>>, vector<1x8x60xf32>
      %72 = vector.shape_cast %71 : vector<1x8x60xf32> to vector<8x60xf32>
      %73 = vector.shape_cast %69 : vector<8x60xf32> to vector<1x8x60xf32>
      tpu.vector_store %arg14[%70, %c0_49, %c0_50], %73 {strides = array<i32>} : memref<60x8x60xf32, #tpu.memory_space<vmem>>, vector<1x8x60xf32>,
    }
    %c60_i32_3 = arith.constant 60 : i32
    %c0 = arith.constant 0 : index
    %c0_4 = arith.constant 0 : index
    %c0_5 = arith.constant 0 : index
    %2 = vector.load %arg14[%c0, %c0_4, %c0_5] : memref<60x8x60xf32, #tpu.memory_space<vmem>>, vector<60x8x60xf32>
    %3 = vector.extract_strided_slice %2 {offsets = [0, 0, 0], sizes = [59, 8, 60], strides = [1, 1, 1]} : vector<60x8x60xf32> to vector<59x8x60xf32>
    %4 = vector.extract_strided_slice %2 {offsets = [1, 0, 0], sizes = [59, 8, 60], strides = [1, 1, 1]} : vector<60x8x60xf32> to vector<59x8x60xf32>
    %5 = arith.maximumf %3, %4 : vector<59x8x60xf32>
    %6 = vector.extract_strided_slice %5 {offsets = [0, 0, 0], sizes = [59, 8, 59], strides = [1, 1, 1]} : vector<59x8x60xf32> to vector<59x8x59xf32>
    %7 = vector.extract_strided_slice %5 {offsets = [0, 0, 1], sizes = [59, 8, 59], strides = [1, 1, 1]} : vector<59x8x60xf32> to vector<59x8x59xf32>
    %8 = arith.maximumf %6, %7 : vector<59x8x59xf32>
    %c0_6 = arith.constant 0 : index
    %c0_7 = arith.constant 0 : index
    %c0_8 = arith.constant 0 : index
    %9 = vector.load %arg15[%c0_6, %c0_7, %c0_8] : memref<59x8x59xf32, #tpu.memory_space<vmem>>, vector<59x8x59xf32>
    tpu.vector_store %arg15[%c0_6, %c0_7, %c0_8], %8 {strides = array<i32>} : memref<59x8x59xf32, #tpu.memory_space<vmem>>, vector<59x8x59xf32>,
    %c0_i32_9 = arith.constant 0 : i32
    %c57_i32 = arith.constant 57 : i32
    %10 = arith.addi %c0_i32_9, %c57_i32 : i32
    %c1_i32_10 = arith.constant 1 : i32
    scf.for %arg18 = %c0_i32_9 to %10 step %c1_i32_10  : i32 {
      %c0_i32_35 = arith.constant 0 : i32
      %41 = arith.addi %arg18, %c0_i32_35 : i32
      %42 = arith.index_cast %41 : i32 to index
      %c0_36 = arith.constant 0 : index
      %c0_37 = arith.constant 0 : index
      %43 = vector.load %arg15[%42, %c0_36, %c0_37] : memref<59x8x59xf32, #tpu.memory_space<vmem>>, vector<1x8x59xf32>
      %44 = vector.shape_cast %43 : vector<1x8x59xf32> to vector<8x59xf32>
      %45 = vector.extract_strided_slice %44 {offsets = [0, 0], sizes = [8, 57], strides = [1, 1]} : vector<8x59xf32> to vector<8x57xf32>
      %46 = vector.extract_strided_slice %44 {offsets = [0, 1], sizes = [8, 57], strides = [1, 1]} : vector<8x59xf32> to vector<8x57xf32>
      %47 = vector.extract_strided_slice %44 {offsets = [0, 2], sizes = [8, 57], strides = [1, 1]} : vector<8x59xf32> to vector<8x57xf32>
      %c1_i32_38 = arith.constant 1 : i32
      %48 = arith.addi %arg18, %c1_i32_38 : i32
      %49 = arith.index_cast %48 : i32 to index
      %c0_39 = arith.constant 0 : index
      %c0_40 = arith.constant 0 : index
      %50 = vector.load %arg15[%49, %c0_39, %c0_40] : memref<59x8x59xf32, #tpu.memory_space<vmem>>, vector<1x8x59xf32>
      %51 = vector.shape_cast %50 : vector<1x8x59xf32> to vector<8x59xf32>
      %52 = vector.extract_strided_slice %51 {offsets = [0, 0], sizes = [8, 57], strides = [1, 1]} : vector<8x59xf32> to vector<8x57xf32>
      %53 = vector.extract_strided_slice %51 {offsets = [0, 1], sizes = [8, 57], strides = [1, 1]} : vector<8x59xf32> to vector<8x57xf32>
      %54 = vector.extract_strided_slice %51 {offsets = [0, 2], sizes = [8, 57], strides = [1, 1]} : vector<8x59xf32> to vector<8x57xf32>
      %c2_i32 = arith.constant 2 : i32
      %55 = arith.addi %arg18, %c2_i32 : i32
      %56 = arith.index_cast %55 : i32 to index
      %c0_41 = arith.constant 0 : index
      %c0_42 = arith.constant 0 : index
      %57 = vector.load %arg15[%56, %c0_41, %c0_42] : memref<59x8x59xf32, #tpu.memory_space<vmem>>, vector<1x8x59xf32>
      %58 = vector.shape_cast %57 : vector<1x8x59xf32> to vector<8x59xf32>
      %59 = vector.extract_strided_slice %58 {offsets = [0, 0], sizes = [8, 57], strides = [1, 1]} : vector<8x59xf32> to vector<8x57xf32>
      %60 = vector.extract_strided_slice %58 {offsets = [0, 1], sizes = [8, 57], strides = [1, 1]} : vector<8x59xf32> to vector<8x57xf32>
      %61 = vector.extract_strided_slice %58 {offsets = [0, 2], sizes = [8, 57], strides = [1, 1]} : vector<8x59xf32> to vector<8x57xf32>
      %62 = tpu.concatenate %45, %46, %47, %52, %53, %54, %59, %60, %61 in 0 : vector<8x57xf32>, vector<8x57xf32>, vector<8x57xf32>, vector<8x57xf32>, vector<8x57xf32>, vector<8x57xf32>, vector<8x57xf32>, vector<8x57xf32>, vector<8x57xf32> -> vector<72x57xf32>
      %c0_43 = arith.constant 0 : index
      %c0_44 = arith.constant 0 : index
      %63 = vector.load %arg6[%c0_43, %c0_44] : memref<8x72xf32, #tpu.memory_space<vmem>>, vector<8x72xf32>
      %cst_45 = arith.constant dense<0.000000e+00> : vector<8x57xf32>
      %64 = tpu.matmul %63, %62, %cst_45 {dimension_numbers = #tpu.dot_dimension_numbers<[1], [0], [0], [1], [0, 0, 1, 1], [], []>} : vector<8x72xf32>, vector<72x57xf32>, vector<8x57xf32> -> vector<8x57xf32>
      %c0_46 = arith.constant 0 : index
      %c0_47 = arith.constant 0 : index
      %65 = vector.load %arg7[%c0_46, %c0_47] : memref<8x1xf32, #tpu.memory_space<vmem>>, vector<8x1xf32>
      %66 = vector.broadcast %65 : vector<8x1xf32> to vector<8x57xf32>
      %67 = arith.addf %64, %66 : vector<8x57xf32>
      %cst_48 = arith.constant 0.000000e+00 : f32
      %68 = vector.broadcast %cst_48 : f32 to vector<8x57xf32>
      %69 = arith.maximumf %67, %68 : vector<8x57xf32>
      %70 = arith.index_cast %arg18 : i32 to index
      %c0_49 = arith.constant 0 : index
      %c0_50 = arith.constant 0 : index
      %71 = vector.load %arg16[%70, %c0_49, %c0_50] : memref<57x8x57xf32, #tpu.memory_space<vmem>>, vector<1x8x57xf32>
      %72 = vector.shape_cast %71 : vector<1x8x57xf32> to vector<8x57xf32>
      %73 = vector.shape_cast %69 : vector<8x57xf32> to vector<1x8x57xf32>
      tpu.vector_store %arg16[%70, %c0_49, %c0_50], %73 {strides = array<i32>} : memref<57x8x57xf32, #tpu.memory_space<vmem>>, vector<1x8x57xf32>,
    }
    %c57_i32_11 = arith.constant 57 : i32
    %c0_i32_12 = arith.constant 0 : i32
    %c55_i32 = arith.constant 55 : i32
    %11 = arith.addi %c0_i32_12, %c55_i32 : i32
    %c1_i32_13 = arith.constant 1 : i32
    scf.for %arg18 = %c0_i32_12 to %11 step %c1_i32_13  : i32 {
      %c0_i32_35 = arith.constant 0 : i32
      %41 = arith.addi %arg18, %c0_i32_35 : i32
      %42 = arith.index_cast %41 : i32 to index
      %c0_36 = arith.constant 0 : index
      %c0_37 = arith.constant 0 : index
      %43 = vector.load %arg16[%42, %c0_36, %c0_37] : memref<57x8x57xf32, #tpu.memory_space<vmem>>, vector<1x8x57xf32>
      %44 = vector.shape_cast %43 : vector<1x8x57xf32> to vector<8x57xf32>
      %45 = vector.extract_strided_slice %44 {offsets = [0, 0], sizes = [8, 55], strides = [1, 1]} : vector<8x57xf32> to vector<8x55xf32>
      %46 = vector.extract_strided_slice %44 {offsets = [0, 1], sizes = [8, 55], strides = [1, 1]} : vector<8x57xf32> to vector<8x55xf32>
      %47 = vector.extract_strided_slice %44 {offsets = [0, 2], sizes = [8, 55], strides = [1, 1]} : vector<8x57xf32> to vector<8x55xf32>
      %c1_i32_38 = arith.constant 1 : i32
      %48 = arith.addi %arg18, %c1_i32_38 : i32
      %49 = arith.index_cast %48 : i32 to index
      %c0_39 = arith.constant 0 : index
      %c0_40 = arith.constant 0 : index
      %50 = vector.load %arg16[%49, %c0_39, %c0_40] : memref<57x8x57xf32, #tpu.memory_space<vmem>>, vector<1x8x57xf32>
      %51 = vector.shape_cast %50 : vector<1x8x57xf32> to vector<8x57xf32>
      %52 = vector.extract_strided_slice %51 {offsets = [0, 0], sizes = [8, 55], strides = [1, 1]} : vector<8x57xf32> to vector<8x55xf32>
      %53 = vector.extract_strided_slice %51 {offsets = [0, 1], sizes = [8, 55], strides = [1, 1]} : vector<8x57xf32> to vector<8x55xf32>
      %54 = vector.extract_strided_slice %51 {offsets = [0, 2], sizes = [8, 55], strides = [1, 1]} : vector<8x57xf32> to vector<8x55xf32>
      %c2_i32 = arith.constant 2 : i32
      %55 = arith.addi %arg18, %c2_i32 : i32
      %56 = arith.index_cast %55 : i32 to index
      %c0_41 = arith.constant 0 : index
      %c0_42 = arith.constant 0 : index
      %57 = vector.load %arg16[%56, %c0_41, %c0_42] : memref<57x8x57xf32, #tpu.memory_space<vmem>>, vector<1x8x57xf32>
      %58 = vector.shape_cast %57 : vector<1x8x57xf32> to vector<8x57xf32>
      %59 = vector.extract_strided_slice %58 {offsets = [0, 0], sizes = [8, 55], strides = [1, 1]} : vector<8x57xf32> to vector<8x55xf32>
      %60 = vector.extract_strided_slice %58 {offsets = [0, 1], sizes = [8, 55], strides = [1, 1]} : vector<8x57xf32> to vector<8x55xf32>
      %61 = vector.extract_strided_slice %58 {offsets = [0, 2], sizes = [8, 55], strides = [1, 1]} : vector<8x57xf32> to vector<8x55xf32>
      %62 = tpu.concatenate %45, %46, %47, %52, %53, %54, %59, %60, %61 in 0 : vector<8x55xf32>, vector<8x55xf32>, vector<8x55xf32>, vector<8x55xf32>, vector<8x55xf32>, vector<8x55xf32>, vector<8x55xf32>, vector<8x55xf32>, vector<8x55xf32> -> vector<72x55xf32>
      %c0_43 = arith.constant 0 : index
      %c0_44 = arith.constant 0 : index
      %63 = vector.load %arg8[%c0_43, %c0_44] : memref<8x72xf32, #tpu.memory_space<vmem>>, vector<8x72xf32>
      %cst_45 = arith.constant dense<0.000000e+00> : vector<8x55xf32>
      %64 = tpu.matmul %63, %62, %cst_45 {dimension_numbers = #tpu.dot_dimension_numbers<[1], [0], [0], [1], [0, 0, 1, 1], [], []>} : vector<8x72xf32>, vector<72x55xf32>, vector<8x55xf32> -> vector<8x55xf32>
      %c0_46 = arith.constant 0 : index
      %c0_47 = arith.constant 0 : index
      %65 = vector.load %arg9[%c0_46, %c0_47] : memref<8x1xf32, #tpu.memory_space<vmem>>, vector<8x1xf32>
      %66 = vector.broadcast %65 : vector<8x1xf32> to vector<8x55xf32>
      %67 = arith.addf %64, %66 : vector<8x55xf32>
      %cst_48 = arith.constant 0.000000e+00 : f32
      %68 = vector.broadcast %cst_48 : f32 to vector<8x55xf32>
      %69 = arith.maximumf %67, %68 : vector<8x55xf32>
      %70 = arith.index_cast %arg18 : i32 to index
      %c0_49 = arith.constant 0 : index
      %c0_50 = arith.constant 0 : index
      %71 = vector.load %arg17[%70, %c0_49, %c0_50] : memref<55x8x55xf32, #tpu.memory_space<vmem>>, vector<1x8x55xf32>
      %72 = vector.shape_cast %71 : vector<1x8x55xf32> to vector<8x55xf32>
      %73 = vector.shape_cast %69 : vector<8x55xf32> to vector<1x8x55xf32>
      tpu.vector_store %arg17[%70, %c0_49, %c0_50], %73 {strides = array<i32>} : memref<55x8x55xf32, #tpu.memory_space<vmem>>, vector<1x8x55xf32>,
    }
    %c55_i32_14 = arith.constant 55 : i32
    %c0_15 = arith.constant 0 : index
    %c0_16 = arith.constant 0 : index
    %c0_17 = arith.constant 0 : index
    %12 = vector.load %arg17[%c0_15, %c0_16, %c0_17] : memref<55x8x55xf32, #tpu.memory_space<vmem>>, vector<55x8x55xf32>
    %13 = vector.extract_strided_slice %12 {offsets = [0, 0, 0], sizes = [54, 8, 55], strides = [1, 1, 1]} : vector<55x8x55xf32> to vector<54x8x55xf32>
    %14 = vector.extract_strided_slice %12 {offsets = [1, 0, 0], sizes = [54, 8, 55], strides = [1, 1, 1]} : vector<55x8x55xf32> to vector<54x8x55xf32>
    %15 = arith.maximumf %13, %14 : vector<54x8x55xf32>
    %16 = vector.extract_strided_slice %15 {offsets = [0, 0, 0], sizes = [54, 8, 54], strides = [1, 1, 1]} : vector<54x8x55xf32> to vector<54x8x54xf32>
    %17 = vector.extract_strided_slice %15 {offsets = [0, 0, 1], sizes = [54, 8, 54], strides = [1, 1, 1]} : vector<54x8x55xf32> to vector<54x8x54xf32>
    %18 = arith.maximumf %16, %17 : vector<54x8x54xf32>
    %c0_18 = arith.constant 0 : index
    %c0_19 = arith.constant 0 : index
    %c0_20 = arith.constant 0 : index
    %c0_21 = arith.constant 0 : index
    %19 = vector.load %arg10[%c0_18, %c0_19, %c0_20, %c0_21] : memref<2x54x8x54xf32, #tpu.memory_space<vmem>>, vector<1x54x8x54xf32>
    %20 = vector.shape_cast %19 : vector<1x54x8x54xf32> to vector<54x8x54xf32>
    %21 = arith.mulf %18, %20 : vector<54x8x54xf32>
    %cst = arith.constant dense<0.000000e+00> : vector<8x54xf32>
    %22 = vector.multi_reduction <add>, %21, %cst [0] : vector<54x8x54xf32> to vector<8x54xf32>
    %cst_22 = arith.constant dense<0.000000e+00> : vector<8xf32>
    %23 = vector.multi_reduction <add>, %22, %cst_22 [1] : vector<8x54xf32> to vector<8xf32>
    %24 = vector.shape_cast %23 : vector<8xf32> to vector<8x1xf32>
    %cst_23 = arith.constant dense<0.000000e+00> : vector<1xf32>
    %25 = vector.multi_reduction <add>, %24, %cst_23 [0] : vector<8x1xf32> to vector<1xf32>
    %26 = vector.shape_cast %25 : vector<1xf32> to vector<1x1xf32>
    %c1 = arith.constant 1 : index
    %c0_24 = arith.constant 0 : index
    %c0_25 = arith.constant 0 : index
    %c0_26 = arith.constant 0 : index
    %27 = vector.load %arg10[%c1, %c0_24, %c0_25, %c0_26] : memref<2x54x8x54xf32, #tpu.memory_space<vmem>>, vector<1x54x8x54xf32>
    %28 = vector.shape_cast %27 : vector<1x54x8x54xf32> to vector<54x8x54xf32>
    %29 = arith.mulf %18, %28 : vector<54x8x54xf32>
    %cst_27 = arith.constant dense<0.000000e+00> : vector<8x54xf32>
    %30 = vector.multi_reduction <add>, %29, %cst_27 [0] : vector<54x8x54xf32> to vector<8x54xf32>
    %cst_28 = arith.constant dense<0.000000e+00> : vector<8xf32>
    %31 = vector.multi_reduction <add>, %30, %cst_28 [1] : vector<8x54xf32> to vector<8xf32>
    %32 = vector.shape_cast %31 : vector<8xf32> to vector<8x1xf32>
    %cst_29 = arith.constant dense<0.000000e+00> : vector<1xf32>
    %33 = vector.multi_reduction <add>, %32, %cst_29 [0] : vector<8x1xf32> to vector<1xf32>
    %34 = vector.shape_cast %33 : vector<1xf32> to vector<1x1xf32>
    %35 = tpu.concatenate %26, %34 in 1 : vector<1x1xf32>, vector<1x1xf32> -> vector<1x2xf32>
    %c0_30 = arith.constant 0 : index
    %c0_31 = arith.constant 0 : index
    %36 = vector.load %arg11[%c0_30, %c0_31] : memref<1x2xf32, #tpu.memory_space<vmem>>, vector<1x2xf32>
    %37 = arith.addf %35, %36 : vector<1x2xf32>
    %c0_32 = arith.constant 0 : index
    %c0_33 = arith.constant 0 : index
    %c0_34 = arith.constant 0 : index
    %38 = vector.load %arg12[%c0_32, %c0_33, %c0_34] : memref<1x1x2xf32, #tpu.memory_space<vmem>>, vector<1x1x2xf32>
    %39 = vector.shape_cast %38 : vector<1x1x2xf32> to vector<1x2xf32>
    %40 = vector.shape_cast %37 : vector<1x2xf32> to vector<1x1x2xf32>
    tpu.vector_store %arg12[%c0_32, %c0_33, %c0_34], %40 {strides = array<i32>} : memref<1x1x2xf32, #tpu.memory_space<vmem>>, vector<1x1x2xf32>,
    return
  }
  func.func @transform_0(%arg0: i32) -> (i32, i32, i32, i32) {
    %c0_i32 = arith.constant 0 : i32
    %c0_i32_0 = arith.constant 0 : i32
    %c0_i32_1 = arith.constant 0 : i32
    %c0_i32_2 = arith.constant 0 : i32
    return %arg0, %c0_i32, %c0_i32_0, %c0_i32_1 : i32, i32, i32, i32
  }
  func.func @transform_1(%arg0: i32) -> (i32, i32) {
    %c0_i32 = arith.constant 0 : i32
    %c0_i32_0 = arith.constant 0 : i32
    %c0_i32_1 = arith.constant 0 : i32
    return %c0_i32, %c0_i32_0 : i32, i32
  }
  func.func @transform_2(%arg0: i32) -> (i32, i32) {
    %c0_i32 = arith.constant 0 : i32
    %c0_i32_0 = arith.constant 0 : i32
    %c0_i32_1 = arith.constant 0 : i32
    return %c0_i32, %c0_i32_0 : i32, i32
  }
  func.func @transform_3(%arg0: i32) -> (i32, i32) {
    %c0_i32 = arith.constant 0 : i32
    %c0_i32_0 = arith.constant 0 : i32
    %c0_i32_1 = arith.constant 0 : i32
    return %c0_i32, %c0_i32_0 : i32, i32
  }
  func.func @transform_4(%arg0: i32) -> (i32, i32) {
    %c0_i32 = arith.constant 0 : i32
    %c0_i32_0 = arith.constant 0 : i32
    %c0_i32_1 = arith.constant 0 : i32
    return %c0_i32, %c0_i32_0 : i32, i32
  }
  func.func @transform_5(%arg0: i32) -> (i32, i32) {
    %c0_i32 = arith.constant 0 : i32
    %c0_i32_0 = arith.constant 0 : i32
    %c0_i32_1 = arith.constant 0 : i32
    return %c0_i32, %c0_i32_0 : i32, i32
  }
  func.func @transform_6(%arg0: i32) -> (i32, i32) {
    %c0_i32 = arith.constant 0 : i32
    %c0_i32_0 = arith.constant 0 : i32
    %c0_i32_1 = arith.constant 0 : i32
    return %c0_i32, %c0_i32_0 : i32, i32
  }
  func.func @transform_7(%arg0: i32) -> (i32, i32) {
    %c0_i32 = arith.constant 0 : i32
    %c0_i32_0 = arith.constant 0 : i32
    %c0_i32_1 = arith.constant 0 : i32
    return %c0_i32, %c0_i32_0 : i32, i32
  }
  func.func @transform_8(%arg0: i32) -> (i32, i32) {
    %c0_i32 = arith.constant 0 : i32
    %c0_i32_0 = arith.constant 0 : i32
    %c0_i32_1 = arith.constant 0 : i32
    return %c0_i32, %c0_i32_0 : i32, i32
  }
  func.func @transform_9(%arg0: i32) -> (i32, i32, i32, i32) {
    %c0_i32 = arith.constant 0 : i32
    %c0_i32_0 = arith.constant 0 : i32
    %c0_i32_1 = arith.constant 0 : i32
    %c0_i32_2 = arith.constant 0 : i32
    %c0_i32_3 = arith.constant 0 : i32
    return %c0_i32, %c0_i32_0, %c0_i32_1, %c0_i32_2 : i32, i32, i32, i32
  }
  func.func @transform_10(%arg0: i32) -> (i32, i32) {
    %c0_i32 = arith.constant 0 : i32
    %c0_i32_0 = arith.constant 0 : i32
    %c0_i32_1 = arith.constant 0 : i32
    return %c0_i32, %c0_i32_0 : i32, i32
  }
  func.func @transform_11(%arg0: i32) -> (i32, i32, i32) {
    %c0_i32 = arith.constant 0 : i32
    %c0_i32_0 = arith.constant 0 : i32
    %c0_i32_1 = arith.constant 0 : i32
    return %arg0, %c0_i32, %c0_i32_0 : i32, i32, i32
  }
}

</mosaic_0001>

<bundles_post_ra>
// kernel: tiny_vgg_forward.1
= control target key start
LH: loop header
LB: loop body
LE: loop exit
PB: predicated region body
PF: predicated region fallthrough
CT: control target
= control target key end

     0   :  { %s4107_s0 = inlined_call_operand.vmem [shape: f32[2,64,8,64], index: 0, kind: input, shape index: {}]   ;;  %s4108_s1 = inlined_call_operand.vmem [shape: f32[8,72], index: 1, kind: input, shape index: {}]   ;;  %s4109_s2 = inlined_call_operand.vmem [shape: f32[8,1], index: 2, kind: input, shape index: {}]   ;;  %s4110_s3 = inlined_call_operand.vmem [shape: f32[8,72], index: 3, kind: input, shape index: {}]   ;;  %s4111_s4 = inlined_call_operand.vmem [shape: f32[8,1], index: 4, kind: input, shape index: {}]   ;;  %s4112_s5 = inlined_call_operand.vmem [shape: f32[8,72], index: 5, kind: input, shape index: {}]   ;;  %s4113_s6 = inlined_call_operand.vmem [shape: f32[8,1], index: 6, kind: input, shape index: {}]   ;;  %s4114_s7 = inlined_call_operand.vmem [shape: f32[8,72], index: 7, kind: input, shape index: {}]   ;;  %s4115_s8 = inlined_call_operand.vmem [shape: f32[8,1], index: 8, kind: input, shape index: {}]   ;;  %s4116_s9 = inlined_call_operand.vmem [shape: f32[2,54,8,54], index: 9, kind: input, shape index: {}]   ;;  %s4117_s10 = inlined_call_operand.vmem [shape: f32[1,2], index: 10, kind: input, shape index: {}]   ;;  %s4118_s11 = inlined_call_operand.hbm [shape: f32[2,1,2], index: 11, kind: output, shape index: {}]  }
   0x1   :  { %4132 = sst [smem:[#allocation19_spill]] %s4107_s0 }
   0x2   :  { %16 = vsyncpa [#allocation8], 0 }
   0x3   :  { %18 = vsyncpa [#allocation8 + $0x1], 0  ;;  %s2855_s17 = smov 0   ;;  %s2857_s18 = smov 0  }
   0x4   :  { %s2859_s19 = smov 0   ;;  %s2861_s20 = smov 0  }
   0x5 LB: > { %s2876_s21 = sadd.s32 4294967295, %s2751_s20   ;;  %s2313_s22 = sadd.s32 4294967294, %s2751_s20   ;;  %s2751_s20 = sphi %s2861_s20, %s4165_s20   ;;  %s2747_s19 = sphi %s2859_s19, %s4164_s19   ;;  %s2743_s18 = sphi %s2857_s18, %s4163_s18   ;;  %s2739_s17 = sphi %s2855_s17, %s4162_s17  }
   0x6   : > { %s2880_s23 = sadd.s32 1, %s2751_s20   ;;  %s267_s24 = sadd.s32 1, %s2747_s19 }
   0x7   : > { %s264_s25 = ssub.s32 %s2751_s20, %s2880_s23  ;;  %p277_p0 = scmp.ne.s32.totalorder %s2747_s19, %s2743_s18 }
   0x8   : > { %p265_p1 = scmp.eq.s32.totalorder %s264_s25, 0  ;;  %p278_p2 = scmp.eq.s32.totalorder %s2876_s21, 1 }
   0x9   : > { %p283_p3 = scmp.ne.s32.totalorder %s2743_s18, %s2739_s17  ;;  %p284_p4 = scmp.eq.s32.totalorder %s2313_s22, 1 }
   0xa   : > { %s2891_s26 = scalar_select %p265_p1, %s2747_s19, %s267_s24  }
   0xb   : > { %p2893_p5 = por %p278_p2, %p277_p0  ;;  %p2897_p6 = por %p284_p4, %p283_p3 }
   0xc   : > { %p2316_p7 = scmp.ge.s32.totalorder %s2751_s20, 1  ;;  %p340_p8 = scmp.lt.s32.totalorder %s2751_s20, 3 }
   0xe   : > { %p341_p9 = pnand %p2316_p7, %p340_p8 }
  0x10   : > { %344 = sbr.rel (%p341_p9) target bundleno = 2113 (0x841), region = 64 }
  0x17   : > { %s377_s29 = sand.u32 1, %s2743_s18   ;;  %p379_p10 = scmp.lt.s32.totalorder %s2876_s21, 1 }
  0x18   : > { %s4135_s0 = sld [smem:[#allocation19_spill]]  ;;  %s2913_s16 = scalar_lea.vmem [#allocation7], %s377_s29 }
  0x19   : > { %s380_s30 = scalar_select %p379_p10, %s2876_s21, 1 }
  0x1a   : > { %s2915_s22 = smov 0  }
  0x1b   : > { %s2400_s12 = sshll.u32 %s380_s30, 9 }
  0x1e   : > { %s2909_s15 = scalar_lea.vmem %s4135_s0, %s2400_s12 }
  0x1f LB: >> { %v2769_v0 = vmov 0.0|0.0   ;;  %s2319_s24 = sshll.u32 %s2755_s22, 3  ;;  %s2770_s30 = smov 127   ;;  %vm2772_vm0 = vmmov 0   ;;  %v2773_v4 = vmov 0.0   ;;  %v2774_v5 = vmov 0   ;;  %s2755_s22 = sphi %s2915_s22, %s389_s22  }
  0x20   : >> { %2525 = vmatprep.subr.bf16.mxu0 %v2769_v0  ;;  %s391_s25 = scalar_lea.vmem %s2909_s15, %s2319_s24  ;;  %s2771_s12 = smov 126   ;;  %2459 = vmatprep.mubr.msk.f32.mxu0 %vm2772_vm0, %v2773_v4  ;;  %v423_v6 = vld [vmem:[%s4109_s2] sm:$0xff]  ;;  %vm429_vm1 = vcmask 588800   ;;  %vm505_vm2 = vcmask 506880  }
  0x21   : >> { %v2321_v1 = vld [vmem:[%s391_s25 + $0x8] sm:$0xff]  ;;  %v392_v2 = vld [vmem:[%s391_s25] sm:$0xff]  ;;  %v2323_v3 = vld [vmem:[%s391_s25 + $0x10] sm:$0xff]  ;;  %2669 = vset.pattern.permute.xlu0 %v2774_v5  ;;  %s389_s22 = sadd.s32 1, %s2755_s22  }
  0x22   : >> { %409 = vrot.lane.b32.xlu1 %v2321_v1, %s2770_s30  ;;  %402 = vrot.lane.b32.xlu0 %v392_v2, %s2770_s30  ;;  %v422_v17 = vld [vmem:[%s4108_s1] sm:$0xff]  ;;  %p386_p11 = scmp.ge.s32.totalorder %s389_s22, 62  }
  0x23   : > { %s2936_s13 = smov (%p386_p11), 0  }
  0x26   : >> { %412 = vrot.lane.b32.xlu1 %v2321_v1, %s2771_s12  ;;  %405 = vrot.lane.b32.xlu0 %v392_v2, %s2771_s12 }
  0x2a   : >> { %416 = vrot.lane.b32.xlu0 %v2323_v3, %s2770_s30  ;;  %419 = vrot.lane.b32.xlu1 %v2323_v3, %s2771_s12  ;;  %s504_s12 = scalar_lea.vmem [#allocation2], %s2319_s24 }
  0x2e   : >> { %426 = vperm.xlu0 %2669, %v423_v6  }
  0x94   : >> { %v410_v7 = vpop.permute.xlu1 %409  ;;  %v403_v8 = vpop.permute.xlu0 %402 }
  0x95   : >> { %v2526_v9 = vpack.c.bf16 %v403_v8, %v392_v2 }
  0x97   : >> { %2527 = vmatpush3.bf16.msra.mxu0 %v2526_v9 }
  0x98   : >> { %v406_v10 = vpop.permute.xlu0 %405  ;;  %2528 = vmatprep.subr.bf16.mxu0 %v2769_v0  ;;  %v413_v12 = vpop.permute.xlu1 %412 }
  0x99   : >> { %v2529_v11 = vpack.c.bf16 %v2321_v1, %v406_v10  ;;  %v2532_v14 = vpack.c.bf16 %v413_v12, %v410_v7 }
  0x9b   : >> { %2530 = vmatpush3.bf16.msra.mxu0 %v2529_v11 }
  0x9c   : >> { %2531 = vmatprep.subr.bf16.mxu0 %v2769_v0  ;;  %v417_v13 = vpop.permute.xlu0 %416  ;;  %v420_v16 = vpop.permute.xlu1 %419 }
  0x9d   : >> { %v2535_v15 = vpack.c.bf16 %v417_v13, %v2323_v3 }
  0x9f   : >> { %2533 = vmatpush3.bf16.msra.mxu0 %v2532_v14 }
  0xa0   : >> { %2534 = vmatprep.subr.bf16.mxu0 %v2769_v0 }
  0xa3   : >> { %2536 = vmatpush3.bf16.msra.mxu0 %v2535_v15 }
  0xa4   : >> { %2457 = vmatprep.subr.mxu0 %v2773_v4 }
  0xa7   : >> { %2458 = vmatpush3.msra.mxu0 %v420_v16 }
  0xa8   : >> { %2460 = vmatmul.mubr.msk.f32.vlgmr.msra.gmra.mrb[0].mxu0 %vm429_vm1, %v422_v17 }
  0xad   : >> { %v427_v18 = vpop.permute.xlu0 %426 }
 0x17a   : > { %388 = sbr.rel (!%p386_p11) target bundleno = 31 (0x1f), region = 144 }
 0x17b   : >> { %v499_v19 = vpop.f32.mrb[0].mxu0 }
 0x17c   : >> { %v500_v20 = vadd.f32 %v499_v19, %v427_v18  ;;  %v2461_v21 = vpop.f32.mrb[1].mxu0 }
 0x17e   : >> { %v503_v22 = vmax.f32 %v500_v20, 0.0 }
 0x180   : >> { %506 = vst.msk [vmem:[%s504_s12] sm:$0xff] %vm505_vm2, %v503_v22 }
 0x181 LB: >> { %v2775_v23 = vmov 0.0|0.0   ;;  %s2325_s14 = sshll.u32 %s2759_s13, 3  ;;  %s2776_s25 = smov 127   ;;  %vm2778_vm3 = vmmov 0   ;;  %v2779_v27 = vmov 0.0   ;;  %v2780_v28 = vmov 0   ;;  %s2759_s13 = sphi %s2936_s13, %s512_s13  }
 0x182   : >> { %2537 = vmatprep.subr.bf16.mxu0 %v2775_v23  ;;  %s514_s24 = scalar_lea.vmem [#allocation2], %s2325_s14  ;;  %s2777_s22 = smov 126   ;;  %2480 = vmatprep.mubr.msk.f32.mxu0 %vm2778_vm3, %v2779_v27  ;;  %v546_v29 = vld [vmem:[%s4111_s4] sm:$0xff]  ;;  %vm628_vm4 = vcmask 490496  }
 0x183   : >> { %2670 = vset.pattern.permute.xlu0 %v2780_v28  ;;  %v545_v40 = vld [vmem:[%s4110_s3] sm:$0xff]  ;;  %s512_s13 = sadd.s32 1, %s2759_s13  }
 0x184   : >> { %p509_p12 = scmp.ge.s32.totalorder %s512_s13, 60  }
 0x185   : > { %vm1044_vm5 = vcmask (%p509_p12), 482304   ;;  %s3310_s13 = smov (%p509_p12), 0  }
 0x187   : >> { %v2327_v24 = vld [vmem:[%s514_s24 + $0x8] sm:$0xff]  ;;  %v515_v25 = vld [vmem:[%s514_s24] sm:$0xff]  ;;  %v2329_v26 = vld [vmem:[%s514_s24 + $0x10] sm:$0xff] }
 0x188   : >> { %532 = vrot.lane.b32.xlu1 %v2327_v24, %s2776_s25  ;;  %525 = vrot.lane.b32.xlu0 %v515_v25, %s2776_s25 }
 0x18c   : >> { %535 = vrot.lane.b32.xlu1 %v2327_v24, %s2777_s22  ;;  %528 = vrot.lane.b32.xlu0 %v515_v25, %s2777_s22 }
 0x190   : >> { %539 = vrot.lane.b32.xlu0 %v2329_v26, %s2776_s25  ;;  %542 = vrot.lane.b32.xlu1 %v2329_v26, %s2777_s22  ;;  %s627_s25 = scalar_lea.vmem [#allocation3], %s2325_s14  ;;  %s2781_s22 = smov (%p509_p12), 127  }
 0x194   : >> { %549 = vperm.xlu0 %2670, %v546_v29  }
 0x1fa   : >> { %v533_v30 = vpop.permute.xlu1 %532  ;;  %v526_v31 = vpop.permute.xlu0 %525 }
 0x1fb   : >> { %v2538_v32 = vpack.c.bf16 %v526_v31, %v515_v25 }
 0x1fd   : >> { %2539 = vmatpush3.bf16.msra.mxu0 %v2538_v32 }
 0x1fe   : >> { %v529_v33 = vpop.permute.xlu0 %528  ;;  %2540 = vmatprep.subr.bf16.mxu0 %v2775_v23  ;;  %v536_v35 = vpop.permute.xlu1 %535 }
 0x1ff   : >> { %v2541_v34 = vpack.c.bf16 %v2327_v24, %v529_v33  ;;  %v2544_v37 = vpack.c.bf16 %v536_v35, %v533_v30 }
 0x201   : >> { %2542 = vmatpush3.bf16.msra.mxu0 %v2541_v34 }
 0x202   : >> { %2543 = vmatprep.subr.bf16.mxu0 %v2775_v23  ;;  %v540_v36 = vpop.permute.xlu0 %539  ;;  %v543_v39 = vpop.permute.xlu1 %542 }
 0x203   : >> { %v2547_v38 = vpack.c.bf16 %v540_v36, %v2329_v26 }
 0x205   : >> { %2545 = vmatpush3.bf16.msra.mxu0 %v2544_v37 }
 0x206   : >> { %2546 = vmatprep.subr.bf16.mxu0 %v2775_v23 }
 0x209   : >> { %2548 = vmatpush3.bf16.msra.mxu0 %v2547_v38 }
 0x20a   : >> { %2478 = vmatprep.subr.mxu0 %v2779_v27 }
 0x20d   : >> { %2479 = vmatpush3.msra.mxu0 %v543_v39 }
 0x20e   : >> { %2481 = vmatmul.mubr.msk.f32.vlgmr.msra.gmra.mrb[0].mxu0 %vm429_vm1, %v545_v40 }
 0x213   : >> { %v550_v41 = vpop.permute.xlu0 %549 }
 0x2e0   : > { %511 = sbr.rel (!%p509_p12) target bundleno = 385 (0x181), region = 155 }
 0x2e1   : >> { %v622_v42 = vpop.f32.mrb[0].mxu0 }
 0x2e2   : >> { %v623_v43 = vadd.f32 %v622_v42, %v550_v41  ;;  %v2482_v44 = vpop.f32.mrb[1].mxu0 }
 0x2e4   : >> { %v626_v45 = vmax.f32 %v623_v43, 0.0 }
 0x2e6   : >> { %629 = vst.msk [vmem:[%s627_s25] sm:$0xff] %vm628_vm4, %v626_v45 }
 0x2ed   : > { %v630_v46 = vld [vmem:[#allocation3] sm:$0xff]  ;;  %v631_v47 = vld [vmem:[#allocation3 + $0x8] sm:$0xff]  ;;  %v632_v48 = vld [vmem:[#allocation3 + $0x10] sm:$0xff] }
 0x2ee   : > { %v2956_v49 = vmax.f32 %v630_v46, %v631_v47  ;;  %v633_v50 = vld [vmem:[#allocation3 + $0x18] sm:$0xff]  ;;  %v634_v51 = vld [vmem:[#allocation3 + $0x20] sm:$0xff]  ;;  %v2962_v53 = vmax.f32 %v631_v47, %v632_v48  ;;  %v635_v55 = vld [vmem:[#allocation3 + $0x28] sm:$0xff] }
 0x2ef   : > { %v2958_v52 = vmax.f32 %v632_v48, %v633_v50  ;;  %v2964_v54 = vmax.f32 %v633_v50, %v634_v51  ;;  %v636_v56 = vld [vmem:[#allocation3 + $0x30] sm:$0xff]  ;;  %v2970_v57 = vmax.f32 %v634_v51, %v635_v55  ;;  %v637_v59 = vld [vmem:[#allocation3 + $0x38] sm:$0xff]  ;;  %v638_v60 = vld [vmem:[#allocation3 + $0x40] sm:$0xff] }
 0x2f0   : > { %808 = vrot.lane.b32.xlu0 %v2956_v49, %s2781_s22  ;;  %v2974_v58 = vmax.f32 %v635_v55, %v636_v56  ;;  %v2978_v61 = vmax.f32 %v636_v56, %v637_v59  ;;  %v2982_v62 = vmax.f32 %v637_v59, %v638_v60  ;;  %v639_v63 = vld [vmem:[#allocation3 + $0x48] sm:$0xff]  ;;  %v640_v0 = vld [vmem:[#allocation3 + $0x50] sm:$0xff]  ;;  %v641_v3 = vld [vmem:[#allocation3 + $0x58] sm:$0xff] }
 0x2f1   : > { %812 = vrot.lane.b32.xlu1 %v2958_v52, %s2781_s22  ;;  %v2986_v1 = vmax.f32 %v638_v60, %v639_v63  ;;  %v2990_v2 = vmax.f32 %v639_v63, %v640_v0  ;;  %v642_v4 = vld [vmem:[#allocation3 + $0x60] sm:$0xff]  ;;  %v2994_v5 = vmax.f32 %v640_v0, %v641_v3  ;;  %v643_v7 = vld [vmem:[#allocation3 + $0x68] sm:$0xff]  ;;  %v644_v8 = vld [vmem:[#allocation3 + $0x70] sm:$0xff] }
 0x2f2   : > { %v2998_v6 = vmax.f32 %v641_v3, %v642_v4  ;;  %v3002_v9 = vmax.f32 %v642_v4, %v643_v7  ;;  %v3006_v10 = vmax.f32 %v643_v7, %v644_v8  ;;  %v645_v11 = vld [vmem:[#allocation3 + $0x78] sm:$0xff]  ;;  %v646_v12 = vld [vmem:[#allocation3 + $0x80] sm:$0xff]  ;;  %v647_v15 = vld [vmem:[#allocation3 + $0x88] sm:$0xff] }
 0x2f3   : > { %v3010_v13 = vmax.f32 %v644_v8, %v645_v11  ;;  %v3014_v14 = vmax.f32 %v645_v11, %v646_v12  ;;  %v648_v16 = vld [vmem:[#allocation3 + $0x90] sm:$0xff]  ;;  %v3018_v17 = vmax.f32 %v646_v12, %v647_v15  ;;  %v649_v19 = vld [vmem:[#allocation3 + $0x98] sm:$0xff]  ;;  %v650_v20 = vld [vmem:[#allocation3 + $0xa0] sm:$0xff] }
 0x2f4   : > { %810 = vrot.lane.b32.xlu0 %v2962_v53, %s2781_s22  ;;  %v3022_v18 = vmax.f32 %v647_v15, %v648_v16  ;;  %v3026_v21 = vmax.f32 %v648_v16, %v649_v19  ;;  %v3030_v22 = vmax.f32 %v649_v19, %v650_v20  ;;  %v651_v23 = vld [vmem:[#allocation3 + $0xa8] sm:$0xff]  ;;  %v652_v24 = vld [vmem:[#allocation3 + $0xb0] sm:$0xff]  ;;  %v653_v27 = vld [vmem:[#allocation3 + $0xb8] sm:$0xff] }
 0x2f5   : > { %814 = vrot.lane.b32.xlu1 %v2964_v54, %s2781_s22  ;;  %v3034_v25 = vmax.f32 %v650_v20, %v651_v23  ;;  %v3038_v26 = vmax.f32 %v651_v23, %v652_v24  ;;  %v654_v28 = vld [vmem:[#allocation3 + $0xc0] sm:$0xff]  ;;  %v3042_v29 = vmax.f32 %v652_v24, %v653_v27  ;;  %v655_v31 = vld [vmem:[#allocation3 + $0xc8] sm:$0xff]  ;;  %v656_v32 = vld [vmem:[#allocation3 + $0xd0] sm:$0xff] }
 0x2f6   : > { %v3046_v30 = vmax.f32 %v653_v27, %v654_v28  ;;  %v3050_v33 = vmax.f32 %v654_v28, %v655_v31  ;;  %v3054_v34 = vmax.f32 %v655_v31, %v656_v32  ;;  %v657_v35 = vld [vmem:[#allocation3 + $0xd8] sm:$0xff]  ;;  %v658_v36 = vld [vmem:[#allocation3 + $0xe0] sm:$0xff]  ;;  %v659_v39 = vld [vmem:[#allocation3 + $0xe8] sm:$0xff] }
 0x2f7   : > { %v3058_v37 = vmax.f32 %v656_v32, %v657_v35  ;;  %v3062_v38 = vmax.f32 %v657_v35, %v658_v36  ;;  %v660_v40 = vld [vmem:[#allocation3 + $0xf0] sm:$0xff]  ;;  %v3066_v41 = vmax.f32 %v658_v36, %v659_v39  ;;  %v661_v43 = vld [vmem:[#allocation3 + $0xf8] sm:$0xff]  ;;  %v662_v44 = vld [vmem:[#allocation3 + $0x100] sm:$0xff] }
 0x2f8   : > { %816 = vrot.lane.b32.xlu0 %v2970_v57, %s2781_s22  ;;  %v3070_v42 = vmax.f32 %v659_v39, %v660_v40  ;;  %v3074_v45 = vmax.f32 %v660_v40, %v661_v43  ;;  %v3078_v46 = vmax.f32 %v661_v43, %v662_v44  ;;  %v663_v47 = vld [vmem:[#allocation3 + $0x108] sm:$0xff]  ;;  %v664_v48 = vld [vmem:[#allocation3 + $0x110] sm:$0xff]  ;;  %v665_v55 = vld [vmem:[#allocation3 + $0x118] sm:$0xff] }
 0x2f9   : > { %818 = vrot.lane.b32.xlu1 %v2974_v58, %s2781_s22  ;;  %v3082_v50 = vmax.f32 %v662_v44, %v663_v47  ;;  %v3086_v51 = vmax.f32 %v663_v47, %v664_v48  ;;  %v666_v56 = vld [vmem:[#allocation3 + $0x120] sm:$0xff]  ;;  %v3090_v59 = vmax.f32 %v664_v48, %v665_v55  ;;  %v667_v63 = vld [vmem:[#allocation3 + $0x128] sm:$0xff]  ;;  %v668_v0 = vld [vmem:[#allocation3 + $0x130] sm:$0xff] }
 0x2fa   : > { %v3094_v60 = vmax.f32 %v665_v55, %v666_v56  ;;  %v3098_v3 = vmax.f32 %v666_v56, %v667_v63  ;;  %v3102_v4 = vmax.f32 %v667_v63, %v668_v0  ;;  %v669_v7 = vld [vmem:[#allocation3 + $0x138] sm:$0xff]  ;;  %v670_v8 = vld [vmem:[#allocation3 + $0x140] sm:$0xff]  ;;  %v671_v15 = vld [vmem:[#allocation3 + $0x148] sm:$0xff] }
 0x2fb   : > { %v3106_v11 = vmax.f32 %v668_v0, %v669_v7  ;;  %v3110_v12 = vmax.f32 %v669_v7, %v670_v8  ;;  %v672_v16 = vld [vmem:[#allocation3 + $0x150] sm:$0xff]  ;;  %v3114_v19 = vmax.f32 %v670_v8, %v671_v15  ;;  %v673_v23 = vld [vmem:[#allocation3 + $0x158] sm:$0xff]  ;;  %v674_v24 = vld [vmem:[#allocation3 + $0x160] sm:$0xff] }
 0x2fc   : > { %820 = vrot.lane.b32.xlu0 %v2978_v61, %s2781_s22  ;;  %v3118_v20 = vmax.f32 %v671_v15, %v672_v16  ;;  %v3122_v27 = vmax.f32 %v672_v16, %v673_v23  ;;  %v3126_v28 = vmax.f32 %v673_v23, %v674_v24  ;;  %v675_v31 = vld [vmem:[#allocation3 + $0x168] sm:$0xff]  ;;  %v676_v32 = vld [vmem:[#allocation3 + $0x170] sm:$0xff]  ;;  %v677_v39 = vld [vmem:[#allocation3 + $0x178] sm:$0xff] }
 0x2fd   : > { %822 = vrot.lane.b32.xlu1 %v2982_v62, %s2781_s22  ;;  %v3130_v35 = vmax.f32 %v674_v24, %v675_v31  ;;  %v3134_v36 = vmax.f32 %v675_v31, %v676_v32  ;;  %v678_v40 = vld [vmem:[#allocation3 + $0x180] sm:$0xff]  ;;  %v3138_v43 = vmax.f32 %v676_v32, %v677_v39  ;;  %v679_v47 = vld [vmem:[#allocation3 + $0x188] sm:$0xff]  ;;  %v680_v48 = vld [vmem:[#allocation3 + $0x190] sm:$0xff] }
 0x2fe   : > { %v3142_v44 = vmax.f32 %v677_v39, %v678_v40  ;;  %v3146_v55 = vmax.f32 %v678_v40, %v679_v47  ;;  %v3150_v56 = vmax.f32 %v679_v47, %v680_v48  ;;  %v681_v63 = vld [vmem:[#allocation3 + $0x198] sm:$0xff]  ;;  %v682_v0 = vld [vmem:[#allocation3 + $0x1a0] sm:$0xff]  ;;  %v683_v15 = vld [vmem:[#allocation3 + $0x1a8] sm:$0xff] }
 0x2ff   : > { %v3154_v7 = vmax.f32 %v680_v48, %v681_v63  ;;  %v3158_v8 = vmax.f32 %v681_v63, %v682_v0  ;;  %v684_v16 = vld [vmem:[#allocation3 + $0x1b0] sm:$0xff]  ;;  %v3162_v23 = vmax.f32 %v682_v0, %v683_v15  ;;  %v685_v31 = vld [vmem:[#allocation3 + $0x1b8] sm:$0xff]  ;;  %v686_v32 = vld [vmem:[#allocation3 + $0x1c0] sm:$0xff] }
 0x300   : > { %824 = vrot.lane.b32.xlu0 %v2986_v1, %s2781_s22  ;;  %v3166_v24 = vmax.f32 %v683_v15, %v684_v16  ;;  %v3170_v39 = vmax.f32 %v684_v16, %v685_v31  ;;  %v3174_v40 = vmax.f32 %v685_v31, %v686_v32  ;;  %v687_v47 = vld [vmem:[#allocation3 + $0x1c8] sm:$0xff]  ;;  %v688_v48 = vld [vmem:[#allocation3 + $0x1d0] sm:$0xff]  ;;  %v689_v15 = vld [vmem:[#allocation3 + $0x1d8] sm:$0xff] }
 0x301   : > { %826 = vrot.lane.b32.xlu1 %v2990_v2, %s2781_s22  ;;  %v3178_v63 = vmax.f32 %v686_v32, %v687_v47  ;;  %v3182_v0 = vmax.f32 %v687_v47, %v688_v48  ;;  %v3186_v16 = vmax.f32 %v688_v48, %v689_v15 }
 0x302   : > { %4136 = vst [vmem:[#allocation10_spill] sm:$0xff] %v3170_v39 }
 0x303   : > { %4137 = vst [vmem:[#allocation11_spill] sm:$0xff] %v3178_v63  ;;  %4138 = vst [vmem:[#allocation12_spill] sm:$0xff] %v3182_v0 }
 0x304   : > { %828 = vrot.lane.b32.xlu0 %v2994_v5, %s2781_s22  ;;  %4139 = vst [vmem:[#allocation13_spill] sm:$0xff] %v3186_v16 }
 0x305   : > { %830 = vrot.lane.b32.xlu1 %v2998_v6, %s2781_s22 }
 0x308   : > { %832 = vrot.lane.b32.xlu0 %v3002_v9, %s2781_s22 }
 0x309   : > { %834 = vrot.lane.b32.xlu1 %v3006_v10, %s2781_s22 }
 0x30c   : > { %836 = vrot.lane.b32.xlu0 %v3010_v13, %s2781_s22 }
 0x30d   : > { %838 = vrot.lane.b32.xlu1 %v3014_v14, %s2781_s22 }
 0x310   : > { %840 = vrot.lane.b32.xlu0 %v3018_v17, %s2781_s22 }
 0x311   : > { %842 = vrot.lane.b32.xlu1 %v3022_v18, %s2781_s22 }
 0x314   : > { %844 = vrot.lane.b32.xlu0 %v3026_v21, %s2781_s22 }
 0x315   : > { %846 = vrot.lane.b32.xlu1 %v3030_v22, %s2781_s22 }
 0x318   : > { %848 = vrot.lane.b32.xlu0 %v3034_v25, %s2781_s22 }
 0x319   : > { %850 = vrot.lane.b32.xlu1 %v3038_v26, %s2781_s22 }
 0x31c   : > { %852 = vrot.lane.b32.xlu0 %v3042_v29, %s2781_s22 }
 0x31d   : > { %854 = vrot.lane.b32.xlu1 %v3046_v30, %s2781_s22 }
 0x320   : > { %856 = vrot.lane.b32.xlu0 %v3050_v33, %s2781_s22 }
 0x321   : > { %858 = vrot.lane.b32.xlu1 %v3054_v34, %s2781_s22 }
 0x324   : > { %860 = vrot.lane.b32.xlu0 %v3058_v37, %s2781_s22 }
 0x325   : > { %862 = vrot.lane.b32.xlu1 %v3062_v38, %s2781_s22 }
 0x328   : > { %864 = vrot.lane.b32.xlu0 %v3066_v41, %s2781_s22 }
 0x329   : > { %866 = vrot.lane.b32.xlu1 %v3070_v42, %s2781_s22 }
 0x32c   : > { %868 = vrot.lane.b32.xlu0 %v3074_v45, %s2781_s22 }
 0x32d   : > { %870 = vrot.lane.b32.xlu1 %v3078_v46, %s2781_s22 }
 0x330   : > { %872 = vrot.lane.b32.xlu0 %v3082_v50, %s2781_s22 }
 0x331   : > { %874 = vrot.lane.b32.xlu1 %v3086_v51, %s2781_s22 }
 0x334   : > { %876 = vrot.lane.b32.xlu0 %v3090_v59, %s2781_s22 }
 0x335   : > { %878 = vrot.lane.b32.xlu1 %v3094_v60, %s2781_s22 }
 0x338   : > { %880 = vrot.lane.b32.xlu0 %v3098_v3, %s2781_s22 }
 0x339   : > { %882 = vrot.lane.b32.xlu1 %v3102_v4, %s2781_s22 }
 0x33c   : > { %884 = vrot.lane.b32.xlu0 %v3106_v11, %s2781_s22 }
 0x33d   : > { %886 = vrot.lane.b32.xlu1 %v3110_v12, %s2781_s22 }
 0x340   : > { %888 = vrot.lane.b32.xlu0 %v3114_v19, %s2781_s22 }
 0x341   : > { %890 = vrot.lane.b32.xlu1 %v3118_v20, %s2781_s22 }
 0x344   : > { %892 = vrot.lane.b32.xlu0 %v3122_v27, %s2781_s22 }
 0x345   : > { %894 = vrot.lane.b32.xlu1 %v3126_v28, %s2781_s22 }
 0x348   : > { %896 = vrot.lane.b32.xlu0 %v3130_v35, %s2781_s22 }
 0x349   : > { %898 = vrot.lane.b32.xlu1 %v3134_v36, %s2781_s22 }
 0x34c   : > { %900 = vrot.lane.b32.xlu0 %v3138_v43, %s2781_s22 }
 0x34d   : > { %902 = vrot.lane.b32.xlu1 %v3142_v44, %s2781_s22 }
 0x350   : > { %904 = vrot.lane.b32.xlu0 %v3146_v55, %s2781_s22 }
 0x351   : > { %906 = vrot.lane.b32.xlu1 %v3150_v56, %s2781_s22 }
 0x354   : > { %908 = vrot.lane.b32.xlu0 %v3154_v7, %s2781_s22 }
 0x355   : > { %910 = vrot.lane.b32.xlu1 %v3158_v8, %s2781_s22 }
 0x358   : > { %912 = vrot.lane.b32.xlu0 %v3162_v23, %s2781_s22 }
 0x359   : > { %914 = vrot.lane.b32.xlu1 %v3166_v24, %s2781_s22 }
 0x35c   : > { %916 = vrot.lane.b32.xlu0 %v3170_v39, %s2781_s22 }
 0x35d   : > { %918 = vrot.lane.b32.xlu1 %v3174_v40, %s2781_s22 }
 0x360   : > { %920 = vrot.lane.b32.xlu0 %v3178_v63, %s2781_s22 }
 0x361   : > { %922 = vrot.lane.b32.xlu1 %v3182_v0, %s2781_s22 }
 0x362   : > { %v809_v31 = vpop.permute.xlu0 %808 }
 0x363   : > { %v985_v39 = vmax.f32 %v2956_v49, %v809_v31  ;;  %v813_v32 = vpop.permute.xlu1 %812 }
 0x364   : > { %924 = vrot.lane.b32.xlu0 %v3186_v16, %s2781_s22  ;;  %v987_v47 = vmax.f32 %v2958_v52, %v813_v32 }
 0x365   : > { %1045 = vst.msk [vmem:[#allocation4] sm:$0xff] %vm1044_vm5, %v985_v39 }
 0x366   : > { %1047 = vst.msk [vmem:[#allocation4 + $0x10] sm:$0xff] %vm1044_vm5, %v987_v47  ;;  %v811_v63 = vpop.permute.xlu0 %810 }
 0x367   : > { %v986_v48 = vmax.f32 %v2962_v53, %v811_v63  ;;  %v815_v15 = vpop.permute.xlu1 %814 }
 0x368   : > { %v988_v0 = vmax.f32 %v2964_v54, %v815_v15 }
 0x369   : > { %1046 = vst.msk [vmem:[#allocation4 + $0x8] sm:$0xff] %vm1044_vm5, %v986_v48 }
 0x36a   : > { %1048 = vst.msk [vmem:[#allocation4 + $0x18] sm:$0xff] %vm1044_vm5, %v988_v0  ;;  %v817_v49 = vpop.permute.xlu0 %816 }
 0x36b   : > { %v989_v31 = vmax.f32 %v2970_v57, %v817_v49  ;;  %v819_v16 = vpop.permute.xlu1 %818 }
 0x36c   : > { %v990_v52 = vmax.f32 %v2974_v58, %v819_v16 }
 0x36d   : > { %1049 = vst.msk [vmem:[#allocation4 + $0x20] sm:$0xff] %vm1044_vm5, %v989_v31 }
 0x36e   : > { %1050 = vst.msk [vmem:[#allocation4 + $0x28] sm:$0xff] %vm1044_vm5, %v990_v52  ;;  %v821_v39 = vpop.permute.xlu0 %820 }
 0x36f   : > { %v991_v53 = vmax.f32 %v2978_v61, %v821_v39  ;;  %v823_v63 = vpop.permute.xlu1 %822 }
 0x370   : > { %v992_v54 = vmax.f32 %v2982_v62, %v823_v63 }
 0x371   : > { %1051 = vst.msk [vmem:[#allocation4 + $0x30] sm:$0xff] %vm1044_vm5, %v991_v53 }
 0x372   : > { %1052 = vst.msk [vmem:[#allocation4 + $0x38] sm:$0xff] %vm1044_vm5, %v992_v54  ;;  %v825_v0 = vpop.permute.xlu0 %824 }
 0x373   : > { %v993_v57 = vmax.f32 %v2986_v1, %v825_v0  ;;  %v827_v32 = vpop.permute.xlu1 %826 }
 0x374   : > { %v994_v58 = vmax.f32 %v2990_v2, %v827_v32 }
 0x375   : > { %1053 = vst.msk [vmem:[#allocation4 + $0x40] sm:$0xff] %vm1044_vm5, %v993_v57 }
 0x376   : > { %1054 = vst.msk [vmem:[#allocation4 + $0x48] sm:$0xff] %vm1044_vm5, %v994_v58  ;;  %v829_v16 = vpop.permute.xlu0 %828 }
 0x377   : > { %v995_v61 = vmax.f32 %v2994_v5, %v829_v16  ;;  %v831_v47 = vpop.permute.xlu1 %830 }
 0x378   : > { %v996_v62 = vmax.f32 %v2998_v6, %v831_v47 }
 0x379   : > { %1055 = vst.msk [vmem:[#allocation4 + $0x50] sm:$0xff] %vm1044_vm5, %v995_v61 }
 0x37a   : > { %1056 = vst.msk [vmem:[#allocation4 + $0x58] sm:$0xff] %vm1044_vm5, %v996_v62  ;;  %v833_v48 = vpop.permute.xlu0 %832 }
 0x37b   : > { %v997_v1 = vmax.f32 %v3002_v9, %v833_v48  ;;  %v835_v15 = vpop.permute.xlu1 %834 }
 0x37c   : > { %v998_v2 = vmax.f32 %v3006_v10, %v835_v15 }
 0x37d   : > { %1057 = vst.msk [vmem:[#allocation4 + $0x60] sm:$0xff] %vm1044_vm5, %v997_v1 }
 0x37e   : > { %1058 = vst.msk [vmem:[#allocation4 + $0x68] sm:$0xff] %vm1044_vm5, %v998_v2  ;;  %v837_v49 = vpop.permute.xlu0 %836 }
 0x37f   : > { %v999_v5 = vmax.f32 %v3010_v13, %v837_v49  ;;  %v839_v31 = vpop.permute.xlu1 %838 }
 0x380   : > { %v1000_v6 = vmax.f32 %v3014_v14, %v839_v31 }
 0x381   : > { %1059 = vst.msk [vmem:[#allocation4 + $0x70] sm:$0xff] %vm1044_vm5, %v999_v5 }
 0x382   : > { %1060 = vst.msk [vmem:[#allocation4 + $0x78] sm:$0xff] %vm1044_vm5, %v1000_v6  ;;  %v841_v52 = vpop.permute.xlu0 %840 }
 0x383   : > { %v1001_v9 = vmax.f32 %v3018_v17, %v841_v52  ;;  %v843_v39 = vpop.permute.xlu1 %842 }
 0x384   : > { %v1002_v10 = vmax.f32 %v3022_v18, %v843_v39 }
 0x385   : > { %1061 = vst.msk [vmem:[#allocation4 + $0x80] sm:$0xff] %vm1044_vm5, %v1001_v9 }
 0x386   : > { %1062 = vst.msk [vmem:[#allocation4 + $0x88] sm:$0xff] %vm1044_vm5, %v1002_v10  ;;  %v845_v53 = vpop.permute.xlu0 %844 }
 0x387   : > { %v1003_v13 = vmax.f32 %v3026_v21, %v845_v53  ;;  %v847_v63 = vpop.permute.xlu1 %846 }
 0x388   : > { %v1004_v14 = vmax.f32 %v3030_v22, %v847_v63 }
 0x389   : > { %1063 = vst.msk [vmem:[#allocation4 + $0x90] sm:$0xff] %vm1044_vm5, %v1003_v13 }
 0x38a   : > { %1064 = vst.msk [vmem:[#allocation4 + $0x98] sm:$0xff] %vm1044_vm5, %v1004_v14  ;;  %v849_v54 = vpop.permute.xlu0 %848 }
 0x38b   : > { %v1005_v17 = vmax.f32 %v3034_v25, %v849_v54  ;;  %v851_v0 = vpop.permute.xlu1 %850 }
 0x38c   : > { %v1006_v18 = vmax.f32 %v3038_v26, %v851_v0 }
 0x38d   : > { %1065 = vst.msk [vmem:[#allocation4 + $0xa0] sm:$0xff] %vm1044_vm5, %v1005_v17 }
 0x38e   : > { %1066 = vst.msk [vmem:[#allocation4 + $0xa8] sm:$0xff] %vm1044_vm5, %v1006_v18  ;;  %v853_v57 = vpop.permute.xlu0 %852 }
 0x38f   : > { %v1007_v21 = vmax.f32 %v3042_v29, %v853_v57  ;;  %v855_v32 = vpop.permute.xlu1 %854 }
 0x390   : > { %v1008_v22 = vmax.f32 %v3046_v30, %v855_v32 }
 0x391   : > { %1067 = vst.msk [vmem:[#allocation4 + $0xb0] sm:$0xff] %vm1044_vm5, %v1007_v21 }
 0x392   : > { %1068 = vst.msk [vmem:[#allocation4 + $0xb8] sm:$0xff] %vm1044_vm5, %v1008_v22  ;;  %v857_v58 = vpop.permute.xlu0 %856 }
 0x393   : > { %v1009_v25 = vmax.f32 %v3050_v33, %v857_v58  ;;  %v859_v16 = vpop.permute.xlu1 %858 }
 0x394   : > { %v1010_v26 = vmax.f32 %v3054_v34, %v859_v16  ;;  %v4140_v16 = vld [vmem:[#allocation10_spill] sm:$0xff] }
 0x395   : > { %1069 = vst.msk [vmem:[#allocation4 + $0xc0] sm:$0xff] %vm1044_vm5, %v1009_v25 }
 0x396   : > { %1070 = vst.msk [vmem:[#allocation4 + $0xc8] sm:$0xff] %vm1044_vm5, %v1010_v26  ;;  %v861_v61 = vpop.permute.xlu0 %860 }
 0x397   : > { %v1011_v29 = vmax.f32 %v3058_v37, %v861_v61  ;;  %v863_v47 = vpop.permute.xlu1 %862 }
 0x398   : > { %v1012_v30 = vmax.f32 %v3062_v38, %v863_v47 }
 0x399   : > { %1071 = vst.msk [vmem:[#allocation4 + $0xd0] sm:$0xff] %vm1044_vm5, %v1011_v29  ;;  %v4141_v29 = vld [vmem:[#allocation11_spill] sm:$0xff] }
 0x39a   : > { %1072 = vst.msk [vmem:[#allocation4 + $0xd8] sm:$0xff] %vm1044_vm5, %v1012_v30  ;;  %v865_v62 = vpop.permute.xlu0 %864  ;;  %v4142_v30 = vld [vmem:[#allocation12_spill] sm:$0xff] }
 0x39b   : > { %v1013_v33 = vmax.f32 %v3066_v41, %v865_v62  ;;  %v867_v48 = vpop.permute.xlu1 %866 }
 0x39c   : > { %v1014_v34 = vmax.f32 %v3070_v42, %v867_v48 }
 0x39d   : > { %1073 = vst.msk [vmem:[#allocation4 + $0xe0] sm:$0xff] %vm1044_vm5, %v1013_v33  ;;  %v4143_v33 = vld [vmem:[#allocation13_spill] sm:$0xff] }
 0x39e   : > { %1074 = vst.msk [vmem:[#allocation4 + $0xe8] sm:$0xff] %vm1044_vm5, %v1014_v34  ;;  %v869_v1 = vpop.permute.xlu0 %868 }
 0x39f   : > { %v1015_v37 = vmax.f32 %v3074_v45, %v869_v1  ;;  %v871_v15 = vpop.permute.xlu1 %870 }
 0x3a0   : > { %v1016_v38 = vmax.f32 %v3078_v46, %v871_v15 }
 0x3a1   : > { %1075 = vst.msk [vmem:[#allocation4 + $0xf0] sm:$0xff] %vm1044_vm5, %v1015_v37 }
 0x3a2   : > { %1076 = vst.msk [vmem:[#allocation4 + $0xf8] sm:$0xff] %vm1044_vm5, %v1016_v38  ;;  %v873_v2 = vpop.permute.xlu0 %872 }
 0x3a3   : > { %v1017_v41 = vmax.f32 %v3082_v50, %v873_v2  ;;  %v875_v49 = vpop.permute.xlu1 %874 }
 0x3a4   : > { %v1018_v42 = vmax.f32 %v3086_v51, %v875_v49 }
 0x3a5   : > { %1077 = vst.msk [vmem:[#allocation4 + $0x100] sm:$0xff] %vm1044_vm5, %v1017_v41 }
 0x3a6   : > { %1078 = vst.msk [vmem:[#allocation4 + $0x108] sm:$0xff] %vm1044_vm5, %v1018_v42  ;;  %v877_v5 = vpop.permute.xlu0 %876 }
 0x3a7   : > { %v1019_v45 = vmax.f32 %v3090_v59, %v877_v5  ;;  %v879_v31 = vpop.permute.xlu1 %878 }
 0x3a8   : > { %v1020_v46 = vmax.f32 %v3094_v60, %v879_v31 }
 0x3a9   : > { %1079 = vst.msk [vmem:[#allocation4 + $0x110] sm:$0xff] %vm1044_vm5, %v1019_v45 }
 0x3aa   : > { %1080 = vst.msk [vmem:[#allocation4 + $0x118] sm:$0xff] %vm1044_vm5, %v1020_v46  ;;  %v881_v6 = vpop.permute.xlu0 %880 }
 0x3ab   : > { %v1021_v50 = vmax.f32 %v3098_v3, %v881_v6  ;;  %v883_v52 = vpop.permute.xlu1 %882 }
 0x3ac   : > { %v1022_v51 = vmax.f32 %v3102_v4, %v883_v52 }
 0x3ad   : > { %1081 = vst.msk [vmem:[#allocation4 + $0x120] sm:$0xff] %vm1044_vm5, %v1021_v50 }
 0x3ae   : > { %1082 = vst.msk [vmem:[#allocation4 + $0x128] sm:$0xff] %vm1044_vm5, %v1022_v51  ;;  %v885_v9 = vpop.permute.xlu0 %884 }
 0x3af   : > { %v1023_v59 = vmax.f32 %v3106_v11, %v885_v9  ;;  %v887_v39 = vpop.permute.xlu1 %886 }
 0x3b0   : > { %v1024_v60 = vmax.f32 %v3110_v12, %v887_v39 }
 0x3b1   : > { %1083 = vst.msk [vmem:[#allocation4 + $0x130] sm:$0xff] %vm1044_vm5, %v1023_v59 }
 0x3b2   : > { %1084 = vst.msk [vmem:[#allocation4 + $0x138] sm:$0xff] %vm1044_vm5, %v1024_v60  ;;  %v889_v10 = vpop.permute.xlu0 %888 }
 0x3b3   : > { %v1025_v3 = vmax.f32 %v3114_v19, %v889_v10  ;;  %v891_v53 = vpop.permute.xlu1 %890 }
 0x3b4   : > { %v1026_v4 = vmax.f32 %v3118_v20, %v891_v53 }
 0x3b5   : > { %1085 = vst.msk [vmem:[#allocation4 + $0x140] sm:$0xff] %vm1044_vm5, %v1025_v3 }
 0x3b6   : > { %1086 = vst.msk [vmem:[#allocation4 + $0x148] sm:$0xff] %vm1044_vm5, %v1026_v4  ;;  %v893_v13 = vpop.permute.xlu0 %892 }
 0x3b7   : > { %v1027_v11 = vmax.f32 %v3122_v27, %v893_v13  ;;  %v895_v63 = vpop.permute.xlu1 %894 }
 0x3b8   : > { %v1028_v12 = vmax.f32 %v3126_v28, %v895_v63 }
 0x3b9   : > { %1087 = vst.msk [vmem:[#allocation4 + $0x150] sm:$0xff] %vm1044_vm5, %v1027_v11 }
 0x3ba   : > { %1088 = vst.msk [vmem:[#allocation4 + $0x158] sm:$0xff] %vm1044_vm5, %v1028_v12  ;;  %v897_v14 = vpop.permute.xlu0 %896 }
 0x3bb   : > { %v1029_v19 = vmax.f32 %v3130_v35, %v897_v14  ;;  %v899_v54 = vpop.permute.xlu1 %898 }
 0x3bc   : > { %v1030_v20 = vmax.f32 %v3134_v36, %v899_v54 }
 0x3bd   : > { %1089 = vst.msk [vmem:[#allocation4 + $0x160] sm:$0xff] %vm1044_vm5, %v1029_v19 }
 0x3be   : > { %1090 = vst.msk [vmem:[#allocation4 + $0x168] sm:$0xff] %vm1044_vm5, %v1030_v20  ;;  %v901_v17 = vpop.permute.xlu0 %900 }
 0x3bf   : > { %v1031_v27 = vmax.f32 %v3138_v43, %v901_v17  ;;  %v903_v0 = vpop.permute.xlu1 %902 }
 0x3c0   : > { %v1032_v28 = vmax.f32 %v3142_v44, %v903_v0 }
 0x3c1   : > { %1091 = vst.msk [vmem:[#allocation4 + $0x170] sm:$0xff] %vm1044_vm5, %v1031_v27 }
 0x3c2   : > { %1092 = vst.msk [vmem:[#allocation4 + $0x178] sm:$0xff] %vm1044_vm5, %v1032_v28  ;;  %v905_v18 = vpop.permute.xlu0 %904 }
 0x3c3   : > { %v1033_v35 = vmax.f32 %v3146_v55, %v905_v18  ;;  %v907_v57 = vpop.permute.xlu1 %906 }
 0x3c4   : > { %v1034_v36 = vmax.f32 %v3150_v56, %v907_v57 }
 0x3c5   : > { %1093 = vst.msk [vmem:[#allocation4 + $0x180] sm:$0xff] %vm1044_vm5, %v1033_v35 }
 0x3c6   : > { %1094 = vst.msk [vmem:[#allocation4 + $0x188] sm:$0xff] %vm1044_vm5, %v1034_v36  ;;  %v909_v21 = vpop.permute.xlu0 %908 }
 0x3c7   : > { %v1035_v43 = vmax.f32 %v3154_v7, %v909_v21  ;;  %v911_v32 = vpop.permute.xlu1 %910 }
 0x3c8   : > { %v1036_v44 = vmax.f32 %v3158_v8, %v911_v32 }
 0x3c9   : > { %1095 = vst.msk [vmem:[#allocation4 + $0x190] sm:$0xff] %vm1044_vm5, %v1035_v43 }
 0x3ca   : > { %1096 = vst.msk [vmem:[#allocation4 + $0x198] sm:$0xff] %vm1044_vm5, %v1036_v44  ;;  %v913_v22 = vpop.permute.xlu0 %912 }
 0x3cb   : > { %v1037_v55 = vmax.f32 %v3162_v23, %v913_v22  ;;  %v915_v58 = vpop.permute.xlu1 %914 }
 0x3cc   : > { %v1038_v56 = vmax.f32 %v3166_v24, %v915_v58 }
 0x3cd   : > { %1097 = vst.msk [vmem:[#allocation4 + $0x1a0] sm:$0xff] %vm1044_vm5, %v1037_v55 }
 0x3ce   : > { %1098 = vst.msk [vmem:[#allocation4 + $0x1a8] sm:$0xff] %vm1044_vm5, %v1038_v56  ;;  %v917_v25 = vpop.permute.xlu0 %916 }
 0x3cf   : > { %v1039_v7 = vmax.f32 %v4140_v16, %v917_v25  ;;  %v919_v26 = vpop.permute.xlu1 %918 }
 0x3d0   : > { %v1040_v8 = vmax.f32 %v3174_v40, %v919_v26 }
 0x3d1   : > { %1099 = vst.msk [vmem:[#allocation4 + $0x1b0] sm:$0xff] %vm1044_vm5, %v1039_v7 }
 0x3d2   : > { %1100 = vst.msk [vmem:[#allocation4 + $0x1b8] sm:$0xff] %vm1044_vm5, %v1040_v8  ;;  %v921_v61 = vpop.permute.xlu0 %920 }
 0x3d3   : > { %v1041_v23 = vmax.f32 %v4141_v29, %v921_v61  ;;  %v923_v47 = vpop.permute.xlu1 %922 }
 0x3d4   : > { %v1042_v24 = vmax.f32 %v4142_v30, %v923_v47 }
 0x3d5   : > { %1101 = vst.msk [vmem:[#allocation4 + $0x1c0] sm:$0xff] %vm1044_vm5, %v1041_v23 }
 0x3d6   : > { %1102 = vst.msk [vmem:[#allocation4 + $0x1c8] sm:$0xff] %vm1044_vm5, %v1042_v24  ;;  %v925_v62 = vpop.permute.xlu0 %924 }
 0x3d7   : > { %v1043_v48 = vmax.f32 %v4143_v33, %v925_v62 }
 0x3d9   : > { %1103 = vst.msk [vmem:[#allocation4 + $0x1d0] sm:$0xff] %vm1044_vm5, %v1043_v48 }
 0x3da LB: >> { %v2782_v40 = vmov 0.0|0.0   ;;  %s2331_s14 = sshll.u32 %s2763_s13, 3  ;;  %s2783_s30 = smov 127   ;;  %vm2785_vm6 = vmmov 0   ;;  %v2786_v15 = vmov 0.0   ;;  %v2787_v38 = vmov 0   ;;  %s2763_s13 = sphi %s3310_s13, %s1109_s13  }
 0x3db   : >> { %2549 = vmatprep.subr.bf16.mxu0 %v2782_v40  ;;  %s1111_s15 = scalar_lea.vmem [#allocation4], %s2331_s14  ;;  %s2784_s12 = smov 126   ;;  %2501 = vmatprep.mubr.msk.f32.mxu0 %vm2785_vm6, %v2786_v15  ;;  %v1143_v2 = vld [vmem:[%s4113_s6] sm:$0xff]  ;;  %vm1225_vm7 = vcmask 465920  }
 0x3dc   : >> { %2671 = vset.pattern.permute.xlu0 %v2787_v38  ;;  %v1142_v51 = vld [vmem:[%s4112_s5] sm:$0xff]  ;;  %s1109_s13 = sadd.s32 1, %s2763_s13  }
 0x3dd   : >> { %p1106_p13 = scmp.ge.s32.totalorder %s1109_s13, 57  }
 0x3de   : > { %s3330_s24 = smov (%p1106_p13), 0  }
 0x3e0   : >> { %v2333_v34 = vld [vmem:[%s1111_s15 + $0x8] sm:$0xff]  ;;  %v1112_v1 = vld [vmem:[%s1111_s15] sm:$0xff]  ;;  %v2335_v37 = vld [vmem:[%s1111_s15 + $0x10] sm:$0xff] }
 0x3e1   : >> { %1129 = vrot.lane.b32.xlu1 %v2333_v34, %s2783_s30  ;;  %1122 = vrot.lane.b32.xlu0 %v1112_v1, %s2783_s30 }
 0x3e5   : >> { %1132 = vrot.lane.b32.xlu1 %v2333_v34, %s2784_s12  ;;  %1125 = vrot.lane.b32.xlu0 %v1112_v1, %s2784_s12 }
 0x3e9   : >> { %1136 = vrot.lane.b32.xlu0 %v2335_v37, %s2783_s30  ;;  %1139 = vrot.lane.b32.xlu1 %v2335_v37, %s2784_s12  ;;  %s1224_s12 = scalar_lea.vmem [#allocation5], %s2331_s14 }
 0x3ed   : >> { %1146 = vperm.xlu0 %2671, %v1143_v2  }
 0x453   : >> { %v1130_v41 = vpop.permute.xlu1 %1129  ;;  %v1123_v49 = vpop.permute.xlu0 %1122 }
 0x454   : >> { %v2550_v42 = vpack.c.bf16 %v1123_v49, %v1112_v1 }
 0x456   : >> { %2551 = vmatpush3.bf16.msra.mxu0 %v2550_v42 }
 0x457   : >> { %v1126_v5 = vpop.permute.xlu0 %1125  ;;  %2552 = vmatprep.subr.bf16.mxu0 %v2782_v40  ;;  %v1133_v31 = vpop.permute.xlu1 %1132 }
 0x458   : >> { %v2553_v45 = vpack.c.bf16 %v2333_v34, %v1126_v5  ;;  %v2556_v6 = vpack.c.bf16 %v1133_v31, %v1130_v41 }
 0x45a   : >> { %2554 = vmatpush3.bf16.msra.mxu0 %v2553_v45 }
 0x45b   : >> { %2555 = vmatprep.subr.bf16.mxu0 %v2782_v40  ;;  %v1137_v46 = vpop.permute.xlu0 %1136  ;;  %v1140_v52 = vpop.permute.xlu1 %1139 }
 0x45c   : >> { %v2559_v50 = vpack.c.bf16 %v1137_v46, %v2335_v37 }
 0x45e   : >> { %2557 = vmatpush3.bf16.msra.mxu0 %v2556_v6 }
 0x45f   : >> { %2558 = vmatprep.subr.bf16.mxu0 %v2782_v40 }
 0x462   : >> { %2560 = vmatpush3.bf16.msra.mxu0 %v2559_v50 }
 0x463   : >> { %2499 = vmatprep.subr.mxu0 %v2786_v15 }
 0x466   : >> { %2500 = vmatpush3.msra.mxu0 %v1140_v52 }
 0x467   : >> { %2502 = vmatmul.mubr.msk.f32.vlgmr.msra.gmra.mrb[0].mxu0 %vm429_vm1, %v1142_v51 }
 0x46c   : >> { %v1147_v9 = vpop.permute.xlu0 %1146 }
 0x539   : > { %1108 = sbr.rel (!%p1106_p13) target bundleno = 986 (0x3da), region = 166 }
 0x53a   : >> { %v1219_v59 = vpop.f32.mrb[0].mxu0 }
 0x53b   : >> { %v1220_v39 = vadd.f32 %v1219_v59, %v1147_v9  ;;  %v2503_v60 = vpop.f32.mrb[1].mxu0 }
 0x53d   : >> { %v1223_v10 = vmax.f32 %v1220_v39, 0.0 }
 0x53f   : >> { %1226 = vst.msk [vmem:[%s1224_s12] sm:$0xff] %vm1225_vm7, %v1223_v10 }
 0x540 LB: >> { %v2788_v3 = vmov 0.0|0.0   ;;  %s2337_s25 = sshll.u32 %s2767_s24, 3  ;;  %s2789_s15 = smov 127   ;;  %vm2791_vm8 = vmmov 0   ;;  %v2792_v11 = vmov 0.0   ;;  %v2793_v63 = vmov 0   ;;  %s2767_s24 = sphi %s3330_s24, %s1232_s24  }
 0x541   : >> { %2561 = vmatprep.subr.bf16.mxu0 %v2788_v3  ;;  %s1234_s14 = scalar_lea.vmem [#allocation5], %s2337_s25  ;;  %s2790_s13 = smov 126   ;;  %2522 = vmatprep.mubr.msk.f32.mxu0 %vm2791_vm8, %v2792_v11  ;;  %v1266_v12 = vld [vmem:[%s4115_s8] sm:$0xff]  ;;  %vm1348_vm9 = vcmask 449536  }
 0x542   : >> { %2672 = vset.pattern.permute.xlu0 %v2793_v63  ;;  %v1265_v57 = vld [vmem:[%s4114_s7] sm:$0xff]  ;;  %s1232_s24 = sadd.s32 1, %s2767_s24  }
 0x543   : >> { %p1229_p0 = scmp.ge.s32.totalorder %s1232_s24, 55  }
 0x544   : > { %vm1837_vm10 = vcmask (%p1229_p0), 441344   ;;  %vm2179_vm11 = vcmask (%p1229_p0), 7168   ;;  %s2397_s30 = sshll.u32 (%p1229_p0), %s2876_s21, 4  ;;  %s2198_s12 = sshll.u32 (%p1229_p0), %s2913_s16, 4  ;;  %vm2183_vm12 = vcmask (%p1229_p0), 8192   ;;  %s4064_s12 = int_to_ptr.vmem [resolvable:$true] %s2198_s12 }
 0x545   : > { %s2673_s24 = scalar_lea.vmem (%p1229_p0), %s4064_s12, 16  ;;  %s2794_s21 = smov (%p1229_p0), [#allocation7]  }
 0x546   : >> { %v2339_v53 = vld [vmem:[%s1234_s14 + $0x8] sm:$0xff]  ;;  %v1235_v4 = vld [vmem:[%s1234_s14] sm:$0xff]  ;;  %v2341_v13 = vld [vmem:[%s1234_s14 + $0x10] sm:$0xff]  ;;  %p2674_p1 = scmp.ne.s32.totalorder (%p1229_p0), %s4064_s12, %s2673_s24 }
 0x547   : >> { %1252 = vrot.lane.b32.xlu1 %v2339_v53, %s2789_s15  ;;  %1245 = vrot.lane.b32.xlu0 %v1235_v4, %s2789_s15 }
 0x548   : > { %p2675_p2 = pnand (%p1229_p0), %p2674_p1, %p2893_p5 }
 0x54a   : > { %p2676_p3 = pneg (%p1229_p0), %p2675_p2 }
 0x54b   : >> { %1255 = vrot.lane.b32.xlu1 %v2339_v53, %s2790_s13  ;;  %1248 = vrot.lane.b32.xlu0 %v1235_v4, %s2790_s13 }
 0x54f   : >> { %1259 = vrot.lane.b32.xlu0 %v2341_v13, %s2789_s15  ;;  %1262 = vrot.lane.b32.xlu1 %v2341_v13, %s2790_s13  ;;  %s1347_s13 = scalar_lea.vmem [#allocation6], %s2337_s25  ;;  %s2677_s25 = sshll.u32 (%p1229_p0), %s2794_s21, 4  ;;  %s2678_s25 = int_to_ptr.vmem [resolvable:$false] %s2677_s25 }
 0x550   : > { %s2679_s0 = scalar_lea.vmem (%p1229_p0), %s2678_s25, 32  ;;  %p2680_p4 = scmp.lt.s32.totalorder (%p1229_p0), %s4064_s12, %s2678_s25 }
 0x551   : > { %p2681_p7 = scmp.lt.s32.totalorder (%p1229_p0), %s2679_s0, %s2673_s24 }
 0x553   : >> { %1269 = vperm.xlu0 %2672, %v1266_v12   ;;  %p2682_p8 = por (%p1229_p0), %p2681_p7, %p2680_p4 }
 0x555   : > { %p2683_p9 = pnand (%p1229_p0), %p2682_p8, %p2676_p3 }
 0x5b9   : >> { %v1253_v14 = vpop.permute.xlu1 %1252  ;;  %v1246_v19 = vpop.permute.xlu0 %1245 }
 0x5ba   : >> { %v2562_v54 = vpack.c.bf16 %v1246_v19, %v1235_v4 }
 0x5bc   : >> { %2563 = vmatpush3.bf16.msra.mxu0 %v2562_v54 }
 0x5bd   : >> { %v1249_v20 = vpop.permute.xlu0 %1248  ;;  %2564 = vmatprep.subr.bf16.mxu0 %v2788_v3  ;;  %v1256_v27 = vpop.permute.xlu1 %1255 }
 0x5be   : >> { %v2565_v17 = vpack.c.bf16 %v2339_v53, %v1249_v20  ;;  %v2568_v28 = vpack.c.bf16 %v1256_v27, %v1253_v14 }
 0x5c0   : >> { %2566 = vmatpush3.bf16.msra.mxu0 %v2565_v17 }
 0x5c1   : >> { %2567 = vmatprep.subr.bf16.mxu0 %v2788_v3  ;;  %v1260_v0 = vpop.permute.xlu0 %1259  ;;  %v1263_v35 = vpop.permute.xlu1 %1262 }
 0x5c2   : >> { %v2571_v18 = vpack.c.bf16 %v1260_v0, %v2341_v13 }
 0x5c4   : >> { %2569 = vmatpush3.bf16.msra.mxu0 %v2568_v28 }
 0x5c5   : >> { %2570 = vmatprep.subr.bf16.mxu0 %v2788_v3 }
 0x5c8   : >> { %2572 = vmatpush3.bf16.msra.mxu0 %v2571_v18 }
 0x5c9   : >> { %2520 = vmatprep.subr.mxu0 %v2792_v11 }
 0x5cc   : >> { %2521 = vmatpush3.msra.mxu0 %v1263_v35 }
 0x5cd   : >> { %2523 = vmatmul.mubr.msk.f32.vlgmr.msra.gmra.mrb[0].mxu0 %vm429_vm1, %v1265_v57 }
 0x5d2   : >> { %v1270_v36 = vpop.permute.xlu0 %1269 }
 0x69f   : > { %1231 = sbr.rel (!%p1229_p0) target bundleno = 1344 (0x540), region = 177 }
 0x6a0   : >> { %v1342_v21 = vpop.f32.mrb[0].mxu0 }
 0x6a1   : >> { %v1343_v43 = vadd.f32 %v1342_v21, %v1270_v36  ;;  %v2524_v32 = vpop.f32.mrb[1].mxu0 }
 0x6a3   : >> { %v1346_v44 = vmax.f32 %v1343_v43, 0.0 }
 0x6a5   : >> { %1349 = vst.msk [vmem:[%s1347_s13] sm:$0xff] %vm1348_vm9, %v1346_v44  ;;  %s4062_s13 = scalar_lea.hbm (%p1229_p0), %s4118_s11, %s2397_s30 }
 0x6ac   : > { %v1350_v22 = vld [vmem:[#allocation6] sm:$0xff]  ;;  %v1351_v55 = vld [vmem:[#allocation6 + $0x8] sm:$0xff]  ;;  %v1352_v58 = vld [vmem:[#allocation6 + $0x10] sm:$0xff] }
 0x6ad   : > { %v3350_v56 = vmax.f32 %v1350_v22, %v1351_v55  ;;  %v1353_v25 = vld [vmem:[#allocation6 + $0x18] sm:$0xff]  ;;  %v1354_v16 = vld [vmem:[#allocation6 + $0x20] sm:$0xff]  ;;  %v3356_v26 = vmax.f32 %v1351_v55, %v1352_v58  ;;  %v1355_v61 = vld [vmem:[#allocation6 + $0x28] sm:$0xff] }
 0x6ae   : > { %v3352_v7 = vmax.f32 %v1352_v58, %v1353_v25  ;;  %v3360_v8 = vmax.f32 %v1353_v25, %v1354_v16  ;;  %v1356_v29 = vld [vmem:[#allocation6 + $0x30] sm:$0xff]  ;;  %v3364_v23 = vmax.f32 %v1354_v16, %v1355_v61  ;;  %v1357_v30 = vld [vmem:[#allocation6 + $0x38] sm:$0xff]  ;;  %v1358_v24 = vld [vmem:[#allocation6 + $0x40] sm:$0xff] }
 0x6af   : > { %1513 = vrot.lane.b32.xlu0 %v3350_v56, %s2781_s22  ;;  %v3368_v47 = vmax.f32 %v1355_v61, %v1356_v29  ;;  %v3372_v62 = vmax.f32 %v1356_v29, %v1357_v30  ;;  %v3376_v33 = vmax.f32 %v1357_v30, %v1358_v24  ;;  %v1359_v48 = vld [vmem:[#allocation6 + $0x48] sm:$0xff]  ;;  %v1360_v40 = vld [vmem:[#allocation6 + $0x50] sm:$0xff]  ;;  %v1361_v37 = vld [vmem:[#allocation6 + $0x58] sm:$0xff] }
 0x6b0   : > { %1517 = vrot.lane.b32.xlu1 %v3352_v7, %s2781_s22  ;;  %v3380_v34 = vmax.f32 %v1358_v24, %v1359_v48  ;;  %v3384_v1 = vmax.f32 %v1359_v48, %v1360_v40  ;;  %v1362_v15 = vld [vmem:[#allocation6 + $0x60] sm:$0xff]  ;;  %v3388_v38 = vmax.f32 %v1360_v40, %v1361_v37  ;;  %v1363_v41 = vld [vmem:[#allocation6 + $0x68] sm:$0xff]  ;;  %v1364_v49 = vld [vmem:[#allocation6 + $0x70] sm:$0xff] }
 0x6b1   : > { %v3392_v2 = vmax.f32 %v1361_v37, %v1362_v15  ;;  %v3396_v42 = vmax.f32 %v1362_v15, %v1363_v41  ;;  %v3400_v5 = vmax.f32 %v1363_v41, %v1364_v49  ;;  %v1365_v45 = vld [vmem:[#allocation6 + $0x78] sm:$0xff]  ;;  %v1366_v31 = vld [vmem:[#allocation6 + $0x80] sm:$0xff]  ;;  %v1367_v50 = vld [vmem:[#allocation6 + $0x88] sm:$0xff] }
 0x6b2   : > { %v3404_v46 = vmax.f32 %v1364_v49, %v1365_v45  ;;  %v3408_v6 = vmax.f32 %v1365_v45, %v1366_v31  ;;  %v1368_v52 = vld [vmem:[#allocation6 + $0x90] sm:$0xff]  ;;  %v3412_v51 = vmax.f32 %v1366_v31, %v1367_v50  ;;  %v1369_v59 = vld [vmem:[#allocation6 + $0x98] sm:$0xff]  ;;  %v1370_v39 = vld [vmem:[#allocation6 + $0xa0] sm:$0xff] }
 0x6b3   : > { %1515 = vrot.lane.b32.xlu0 %v3356_v26, %s2781_s22  ;;  %v3416_v9 = vmax.f32 %v1367_v50, %v1368_v52  ;;  %v3420_v60 = vmax.f32 %v1368_v52, %v1369_v59  ;;  %v3424_v10 = vmax.f32 %v1369_v59, %v1370_v39  ;;  %v1371_v3 = vld [vmem:[#allocation6 + $0xa8] sm:$0xff]  ;;  %v1372_v53 = vld [vmem:[#allocation6 + $0xb0] sm:$0xff]  ;;  %v1373_v11 = vld [vmem:[#allocation6 + $0xb8] sm:$0xff] }
 0x6b4   : > { %1519 = vrot.lane.b32.xlu1 %v3360_v8, %s2781_s22  ;;  %v3428_v4 = vmax.f32 %v1370_v39, %v1371_v3  ;;  %v3432_v13 = vmax.f32 %v1371_v3, %v1372_v53  ;;  %v1374_v63 = vld [vmem:[#allocation6 + $0xc0] sm:$0xff]  ;;  %v3436_v12 = vmax.f32 %v1372_v53, %v1373_v11  ;;  %v1375_v19 = vld [vmem:[#allocation6 + $0xc8] sm:$0xff]  ;;  %v1376_v54 = vld [vmem:[#allocation6 + $0xd0] sm:$0xff] }
 0x6b5   : > { %v3440_v14 = vmax.f32 %v1373_v11, %v1374_v63  ;;  %v3444_v20 = vmax.f32 %v1374_v63, %v1375_v19  ;;  %v3448_v17 = vmax.f32 %v1375_v19, %v1376_v54  ;;  %v1377_v27 = vld [vmem:[#allocation6 + $0xd8] sm:$0xff]  ;;  %v1378_v0 = vld [vmem:[#allocation6 + $0xe0] sm:$0xff]  ;;  %v1379_v35 = vld [vmem:[#allocation6 + $0xe8] sm:$0xff] }
 0x6b6   : > { %v3452_v28 = vmax.f32 %v1376_v54, %v1377_v27  ;;  %v3456_v18 = vmax.f32 %v1377_v27, %v1378_v0  ;;  %v1380_v57 = vld [vmem:[#allocation6 + $0xf0] sm:$0xff]  ;;  %v3460_v36 = vmax.f32 %v1378_v0, %v1379_v35  ;;  %v1381_v43 = vld [vmem:[#allocation6 + $0xf8] sm:$0xff]  ;;  %v1382_v32 = vld [vmem:[#allocation6 + $0x100] sm:$0xff] }
 0x6b7   : > { %1521 = vrot.lane.b32.xlu0 %v3364_v23, %s2781_s22  ;;  %v3464_v21 = vmax.f32 %v1379_v35, %v1380_v57  ;;  %v3468_v44 = vmax.f32 %v1380_v57, %v1381_v43  ;;  %v3472_v22 = vmax.f32 %v1381_v43, %v1382_v32  ;;  %v1383_v55 = vld [vmem:[#allocation6 + $0x108] sm:$0xff]  ;;  %v1384_v58 = vld [vmem:[#allocation6 + $0x110] sm:$0xff]  ;;  %v1385_v61 = vld [vmem:[#allocation6 + $0x118] sm:$0xff] }
 0x6b8   : > { %1523 = vrot.lane.b32.xlu1 %v3368_v47, %s2781_s22  ;;  %v3476_v25 = vmax.f32 %v1382_v32, %v1383_v55  ;;  %v3480_v16 = vmax.f32 %v1383_v55, %v1384_v58  ;;  %v1386_v29 = vld [vmem:[#allocation6 + $0x120] sm:$0xff]  ;;  %v3484_v30 = vmax.f32 %v1384_v58, %v1385_v61  ;;  %v1387_v48 = vld [vmem:[#allocation6 + $0x128] sm:$0xff]  ;;  %v1388_v40 = vld [vmem:[#allocation6 + $0x130] sm:$0xff] }
 0x6b9   : > { %v3488_v24 = vmax.f32 %v1385_v61, %v1386_v29  ;;  %v3492_v37 = vmax.f32 %v1386_v29, %v1387_v48  ;;  %v3496_v15 = vmax.f32 %v1387_v48, %v1388_v40  ;;  %v1389_v41 = vld [vmem:[#allocation6 + $0x138] sm:$0xff]  ;;  %v1390_v49 = vld [vmem:[#allocation6 + $0x140] sm:$0xff]  ;;  %v1391_v50 = vld [vmem:[#allocation6 + $0x148] sm:$0xff] }
 0x6ba   : > { %v3500_v45 = vmax.f32 %v1388_v40, %v1389_v41  ;;  %v3504_v31 = vmax.f32 %v1389_v41, %v1390_v49  ;;  %v1392_v52 = vld [vmem:[#allocation6 + $0x150] sm:$0xff]  ;;  %v3508_v59 = vmax.f32 %v1390_v49, %v1391_v50  ;;  %v1393_v3 = vld [vmem:[#allocation6 + $0x158] sm:$0xff]  ;;  %v1394_v53 = vld [vmem:[#allocation6 + $0x160] sm:$0xff] }
 0x6bb   : > { %1525 = vrot.lane.b32.xlu0 %v3372_v62, %s2781_s22  ;;  %v3512_v39 = vmax.f32 %v1391_v50, %v1392_v52  ;;  %v3516_v11 = vmax.f32 %v1392_v52, %v1393_v3  ;;  %v3520_v63 = vmax.f32 %v1393_v3, %v1394_v53  ;;  %v1395_v19 = vld [vmem:[#allocation6 + $0x168] sm:$0xff]  ;;  %v1396_v54 = vld [vmem:[#allocation6 + $0x170] sm:$0xff]  ;;  %v1397_v35 = vld [vmem:[#allocation6 + $0x178] sm:$0xff] }
 0x6bc   : > { %1527 = vrot.lane.b32.xlu1 %v3376_v33, %s2781_s22  ;;  %v3524_v27 = vmax.f32 %v1394_v53, %v1395_v19  ;;  %v3528_v0 = vmax.f32 %v1395_v19, %v1396_v54  ;;  %v1398_v57 = vld [vmem:[#allocation6 + $0x180] sm:$0xff]  ;;  %v3532_v43 = vmax.f32 %v1396_v54, %v1397_v35  ;;  %v1399_v55 = vld [vmem:[#allocation6 + $0x188] sm:$0xff]  ;;  %v1400_v58 = vld [vmem:[#allocation6 + $0x190] sm:$0xff] }
 0x6bd   : > { %v3536_v32 = vmax.f32 %v1397_v35, %v1398_v57  ;;  %v3540_v61 = vmax.f32 %v1398_v57, %v1399_v55  ;;  %v3544_v29 = vmax.f32 %v1399_v55, %v1400_v58  ;;  %v1401_v48 = vld [vmem:[#allocation6 + $0x198] sm:$0xff]  ;;  %v1402_v40 = vld [vmem:[#allocation6 + $0x1a0] sm:$0xff]  ;;  %v1403_v50 = vld [vmem:[#allocation6 + $0x1a8] sm:$0xff] }
 0x6be   : > { %4144 = vst [vmem:[#allocation10_spill] sm:$0xff] %v3528_v0  ;;  %4145 = vst [vmem:[#allocation11_spill] sm:$0xff] %v3532_v43  ;;  %v3548_v41 = vmax.f32 %v1400_v58, %v1401_v48  ;;  %v3552_v49 = vmax.f32 %v1401_v48, %v1402_v40  ;;  %v1404_v52 = vld [vmem:[#allocation6 + $0x1b0] sm:$0xff]  ;;  %v3556_v3 = vmax.f32 %v1402_v40, %v1403_v50  ;;  %v2343_v35 = vld [vmem:[%s4116_s9 + $0x1b0] sm:$0xff] }
 0x6bf   : > { %1529 = vrot.lane.b32.xlu0 %v3380_v34, %s2781_s22  ;;  %4146 = vst [vmem:[#allocation12_spill] sm:$0xff] %v3536_v32  ;;  %4147 = vst [vmem:[#allocation13_spill] sm:$0xff] %v3540_v61  ;;  %v3560_v53 = vmax.f32 %v1403_v50, %v1404_v52  ;;  %v1729_v54 = vld [vmem:[%s4116_s9] sm:$0xff]  ;;  %v1731_v58 = vld [vmem:[%s4116_s9 + $0x10] sm:$0xff] }
 0x6c0   : > { %1531 = vrot.lane.b32.xlu1 %v3384_v1, %s2781_s22  ;;  %4148 = vst [vmem:[#allocation14_spill] sm:$0xff] %v3544_v29  ;;  %4149 = vst [vmem:[#allocation15_spill] sm:$0xff] %v3548_v41  ;;  %v2345_v40 = vld [vmem:[%s4116_s9 + $0x1c0] sm:$0xff] }
 0x6c1   : > { %4150 = vst [vmem:[#allocation16_spill] sm:$0xff] %v3552_v49  ;;  %4151 = vst [vmem:[#allocation17_spill] sm:$0xff] %v3556_v3 }
 0x6c2   : > { %4152 = vst [vmem:[#allocation18_spill] sm:$0xff] %v3560_v53 }
 0x6c3   : > { %1533 = vrot.lane.b32.xlu0 %v3388_v38, %s2781_s22 }
 0x6c4   : > { %1535 = vrot.lane.b32.xlu1 %v3392_v2, %s2781_s22 }
 0x6c7   : > { %1537 = vrot.lane.b32.xlu0 %v3396_v42, %s2781_s22 }
 0x6c8   : > { %1539 = vrot.lane.b32.xlu1 %v3400_v5, %s2781_s22 }
 0x6cb   : > { %1541 = vrot.lane.b32.xlu0 %v3404_v46, %s2781_s22 }
 0x6cc   : > { %1543 = vrot.lane.b32.xlu1 %v3408_v6, %s2781_s22 }
 0x6cf   : > { %1545 = vrot.lane.b32.xlu0 %v3412_v51, %s2781_s22 }
 0x6d0   : > { %1547 = vrot.lane.b32.xlu1 %v3416_v9, %s2781_s22 }
 0x6d3   : > { %1549 = vrot.lane.b32.xlu0 %v3420_v60, %s2781_s22 }
 0x6d4   : > { %1551 = vrot.lane.b32.xlu1 %v3424_v10, %s2781_s22 }
 0x6d7   : > { %1553 = vrot.lane.b32.xlu0 %v3428_v4, %s2781_s22 }
 0x6d8   : > { %1555 = vrot.lane.b32.xlu1 %v3432_v13, %s2781_s22 }
 0x6db   : > { %1557 = vrot.lane.b32.xlu0 %v3436_v12, %s2781_s22 }
 0x6dc   : > { %1559 = vrot.lane.b32.xlu1 %v3440_v14, %s2781_s22 }
 0x6df   : > { %1561 = vrot.lane.b32.xlu0 %v3444_v20, %s2781_s22 }
 0x6e0   : > { %1563 = vrot.lane.b32.xlu1 %v3448_v17, %s2781_s22 }
 0x6e3   : > { %1565 = vrot.lane.b32.xlu0 %v3452_v28, %s2781_s22 }
 0x6e4   : > { %1567 = vrot.lane.b32.xlu1 %v3456_v18, %s2781_s22 }
 0x6e7   : > { %1569 = vrot.lane.b32.xlu0 %v3460_v36, %s2781_s22 }
 0x6e8   : > { %1571 = vrot.lane.b32.xlu1 %v3464_v21, %s2781_s22 }
 0x6eb   : > { %1573 = vrot.lane.b32.xlu0 %v3468_v44, %s2781_s22 }
 0x6ec   : > { %1575 = vrot.lane.b32.xlu1 %v3472_v22, %s2781_s22 }
 0x6ef   : > { %1577 = vrot.lane.b32.xlu0 %v3476_v25, %s2781_s22 }
 0x6f0   : > { %1579 = vrot.lane.b32.xlu1 %v3480_v16, %s2781_s22 }
 0x6f3   : > { %1581 = vrot.lane.b32.xlu0 %v3484_v30, %s2781_s22 }
 0x6f4   : > { %1583 = vrot.lane.b32.xlu1 %v3488_v24, %s2781_s22 }
 0x6f7   : > { %1585 = vrot.lane.b32.xlu0 %v3492_v37, %s2781_s22 }
 0x6f8   : > { %1587 = vrot.lane.b32.xlu1 %v3496_v15, %s2781_s22 }
 0x6fb   : > { %1589 = vrot.lane.b32.xlu0 %v3500_v45, %s2781_s22 }
 0x6fc   : > { %1591 = vrot.lane.b32.xlu1 %v3504_v31, %s2781_s22 }
 0x6ff   : > { %1593 = vrot.lane.b32.xlu0 %v3508_v59, %s2781_s22 }
 0x700   : > { %1595 = vrot.lane.b32.xlu1 %v3512_v39, %s2781_s22 }
 0x703   : > { %1597 = vrot.lane.b32.xlu0 %v3516_v11, %s2781_s22 }
 0x704   : > { %1599 = vrot.lane.b32.xlu1 %v3520_v63, %s2781_s22 }
 0x707   : > { %1601 = vrot.lane.b32.xlu0 %v3524_v27, %s2781_s22 }
 0x708   : > { %1603 = vrot.lane.b32.xlu1 %v3528_v0, %s2781_s22 }
 0x70b   : > { %1605 = vrot.lane.b32.xlu0 %v3532_v43, %s2781_s22  ;;  %v2347_v43 = vld [vmem:[%s4116_s9 + $0x1d0] sm:$0xff] }
 0x70c   : > { %1607 = vrot.lane.b32.xlu1 %v3536_v32, %s2781_s22 }
 0x70f   : > { %1609 = vrot.lane.b32.xlu0 %v3540_v61, %s2781_s22 }
 0x710   : > { %1611 = vrot.lane.b32.xlu1 %v3544_v29, %s2781_s22 }
 0x713   : > { %1613 = vrot.lane.b32.xlu0 %v3548_v41, %s2781_s22 }
 0x714   : > { %1615 = vrot.lane.b32.xlu1 %v3552_v49, %s2781_s22 }
 0x717   : > { %1617 = vrot.lane.b32.xlu0 %v3556_v3, %s2781_s22 }
 0x718   : > { %1619 = vrot.lane.b32.xlu1 %v3560_v53, %s2781_s22  ;;  %v1730_v53 = vld [vmem:[%s4116_s9 + $0x8] sm:$0xff]  ;;  %s2186_s22 = scalar_lea.sflag [#allocation8], %s377_s29 }
 0x721   : > { %v1514_v19 = vpop.permute.xlu0 %1513 }
 0x722   : > { %v1675_v57 = vmax.f32 %v3350_v56, %v1514_v19  ;;  %v1518_v55 = vpop.permute.xlu1 %1517  ;;  %v2344_v56 = vld [vmem:[%s4116_s9 + $0x1b8] sm:$0xff] }
 0x723   : > { %v1677_v48 = vmax.f32 %v3352_v7, %v1518_v55  ;;  %v1732_v7 = vld [vmem:[%s4116_s9 + $0x18] sm:$0xff] }
 0x724   : > { %v1783_v50 = vmul.f32 %v1729_v54, %v1675_v57  ;;  %v2009_v52 = vmul.f32 %v2343_v35, %v1675_v57  ;;  %v2346_v54 = vld [vmem:[%s4116_s9 + $0x1c8] sm:$0xff] }
 0x725   : > { %v1516_v19 = vpop.permute.xlu0 %1515  ;;  %v1785_v3 = vmul.f32 %v1731_v58, %v1677_v48  ;;  %v2011_v57 = vmul.f32 %v2345_v40, %v1677_v48 }
 0x726   : > { %v1676_v49 = vmax.f32 %v3356_v26, %v1516_v19  ;;  %v1520_v35 = vpop.permute.xlu1 %1519  ;;  %v1838_v61 = vsel %vm1837_vm10, %v1783_v50, 0.0  ;;  %v2063_v58 = vsel %vm1837_vm10, %v2009_v52, 0.0  ;;  %v1733_v19 = vld [vmem:[%s4116_s9 + $0x20] sm:$0xff] }
 0x727   : > { %v1678_v55 = vmax.f32 %v3360_v8, %v1520_v35  ;;  %v1841_v48 = vsel %vm1837_vm10, %v1785_v3, 0.0  ;;  %v2066_v50 = vsel %vm1837_vm10, %v2011_v57, 0.0  ;;  %v2348_v3 = vld [vmem:[%s4116_s9 + $0x1d8] sm:$0xff] }
 0x728   : > { %v1784_v41 = vmul.f32 %v1730_v53, %v1676_v49  ;;  %v2010_v29 = vmul.f32 %v2344_v56, %v1676_v49 }
 0x729   : > { %v1786_v32 = vmul.f32 %v1732_v7, %v1678_v55  ;;  %v2012_v26 = vmul.f32 %v2346_v54, %v1678_v55  ;;  %v1522_v0 = vpop.permute.xlu0 %1521  ;;  %v1734_v54 = vld [vmem:[%s4116_s9 + $0x28] sm:$0xff] }
 0x72a   : > { %v1839_v8 = vsel %vm1837_vm10, %v1784_v41, 0.0  ;;  %v2064_v49 = vsel %vm1837_vm10, %v2010_v29, 0.0  ;;  %v1679_v53 = vmax.f32 %v3364_v23, %v1522_v0  ;;  %v1524_v40 = vpop.permute.xlu1 %1523 }
 0x72b   : > { %v1840_v52 = vadd.f32 %v1839_v8, %v1838_v61  ;;  %v2065_v56 = vadd.f32 %v2064_v49, %v2063_v58  ;;  %v1843_v7 = vsel %vm1837_vm10, %v1786_v32, 0.0  ;;  %v2068_v41 = vsel %vm1837_vm10, %v2012_v26, 0.0  ;;  %v1735_v49 = vld [vmem:[%s4116_s9 + $0x30] sm:$0xff]  ;;  %v2349_v26 = vld [vmem:[%s4116_s9 + $0x1e0] sm:$0xff] }
 0x72c   : > { %v1787_v29 = vmul.f32 %v1733_v19, %v1679_v53  ;;  %v2013_v35 = vmul.f32 %v2347_v43, %v1679_v53  ;;  %v1680_v23 = vmax.f32 %v3368_v47, %v1524_v40  ;;  %v1736_v53 = vld [vmem:[%s4116_s9 + $0x38] sm:$0xff]  ;;  %v2350_v40 = vld [vmem:[%s4116_s9 + $0x1e8] sm:$0xff] }
 0x72d   : > { %v1842_v0 = vadd.f32 %v1841_v48, %v1840_v52  ;;  %v2067_v57 = vadd.f32 %v2066_v50, %v2065_v56  ;;  %v1526_v61 = vpop.permute.xlu0 %1525 }
 0x72e   : > { %v1845_v55 = vsel %vm1837_vm10, %v1787_v29, 0.0  ;;  %v2070_v32 = vsel %vm1837_vm10, %v2013_v35, 0.0  ;;  %v1788_v58 = vmul.f32 %v1734_v54, %v1680_v23  ;;  %v2014_v8 = vmul.f32 %v2348_v3, %v1680_v23  ;;  %v1528_v43 = vpop.permute.xlu1 %1527  ;;  %v2351_v29 = vld [vmem:[%s4116_s9 + $0x1f0] sm:$0xff] }
 0x72f   : > { %v1844_v19 = vadd.f32 %v1843_v7, %v1842_v0  ;;  %v2069_v47 = vadd.f32 %v2068_v41, %v2067_v57  ;;  %v1681_v48 = vmax.f32 %v3372_v62, %v1526_v61  ;;  %v1682_v50 = vmax.f32 %v3376_v33, %v1528_v43  ;;  %v1737_v62 = vld [vmem:[%s4116_s9 + $0x40] sm:$0xff] }
 0x730   : > { %v1847_v52 = vsel %vm1837_vm10, %v1788_v58, 0.0  ;;  %v2072_v56 = vsel %vm1837_vm10, %v2014_v8, 0.0 }
 0x731   : > { %v1846_v54 = vadd.f32 %v1845_v55, %v1844_v19  ;;  %v2071_v3 = vadd.f32 %v2070_v32, %v2069_v47  ;;  %v1789_v7 = vmul.f32 %v1735_v49, %v1681_v48  ;;  %v2015_v41 = vmul.f32 %v2349_v26, %v1681_v48  ;;  %v1530_v35 = vpop.permute.xlu0 %1529  ;;  %v1738_v19 = vld [vmem:[%s4116_s9 + $0x48] sm:$0xff] }
 0x732   : > { %v1790_v23 = vmul.f32 %v1736_v53, %v1682_v50  ;;  %v2016_v0 = vmul.f32 %v2350_v40, %v1682_v50  ;;  %v1683_v33 = vmax.f32 %v3380_v34, %v1530_v35  ;;  %v1532_v57 = vpop.permute.xlu1 %1531  ;;  %v2352_v34 = vld [vmem:[%s4116_s9 + $0x1f8] sm:$0xff]  ;;  %v1739_v40 = vld [vmem:[%s4116_s9 + $0x50] sm:$0xff]  ;;  %v2353_v50 = vld [vmem:[%s4116_s9 + $0x200] sm:$0xff] }
 0x733   : > { %v1848_v61 = vadd.f32 %v1847_v52, %v1846_v54  ;;  %v2073_v58 = vadd.f32 %v2072_v56, %v2071_v3  ;;  %v1849_v55 = vsel %vm1837_vm10, %v1789_v7, 0.0  ;;  %v2074_v32 = vsel %vm1837_vm10, %v2015_v41, 0.0  ;;  %v1740_v35 = vld [vmem:[%s4116_s9 + $0x58] sm:$0xff] }
 0x734   : > { %v1851_v8 = vsel %vm1837_vm10, %v1790_v23, 0.0  ;;  %v2076_v49 = vsel %vm1837_vm10, %v2016_v0, 0.0  ;;  %v1791_v26 = vmul.f32 %v1737_v62, %v1683_v33  ;;  %v2017_v43 = vmul.f32 %v2351_v29, %v1683_v33  ;;  %v2354_v23 = vld [vmem:[%s4116_s9 + $0x208] sm:$0xff] }
 0x735   : > { %v1850_v47 = vadd.f32 %v1849_v55, %v1848_v61  ;;  %v2075_v48 = vadd.f32 %v2074_v32, %v2073_v58  ;;  %v1684_v53 = vmax.f32 %v3384_v1, %v1532_v57  ;;  %v1534_v52 = vpop.permute.xlu0 %1533 }
 0x736   : > { %v1853_v56 = vsel %vm1837_vm10, %v1791_v26, 0.0  ;;  %v2078_v54 = vsel %vm1837_vm10, %v2017_v43, 0.0  ;;  %v1685_v3 = vmax.f32 %v3388_v38, %v1534_v52  ;;  %v1536_v7 = vpop.permute.xlu1 %1535 }
 0x737   : > { %v1852_v41 = vadd.f32 %v1851_v8, %v1850_v47  ;;  %v2077_v62 = vadd.f32 %v2076_v49, %v2075_v48  ;;  %v1792_v29 = vmul.f32 %v1738_v19, %v1684_v53  ;;  %v2018_v1 = vmul.f32 %v2352_v34, %v1684_v53  ;;  %v1741_v19 = vld [vmem:[%s4116_s9 + $0x60] sm:$0xff] }
 0x738   : > { %v1793_v0 = vmul.f32 %v1739_v40, %v1685_v3  ;;  %v2019_v33 = vmul.f32 %v2353_v50, %v1685_v3  ;;  %v1686_v57 = vmax.f32 %v3392_v2, %v1536_v7  ;;  %v2355_v2 = vld [vmem:[%s4116_s9 + $0x210] sm:$0xff]  ;;  %v1742_v40 = vld [vmem:[%s4116_s9 + $0x68] sm:$0xff]  ;;  %v2356_v50 = vld [vmem:[%s4116_s9 + $0x218] sm:$0xff] }
 0x739   : > { %v1854_v61 = vadd.f32 %v1853_v56, %v1852_v41  ;;  %v2079_v58 = vadd.f32 %v2078_v54, %v2077_v62  ;;  %v1855_v38 = vsel %vm1837_vm10, %v1792_v29, 0.0  ;;  %v2080_v55 = vsel %vm1837_vm10, %v2018_v1, 0.0  ;;  %v1538_v32 = vpop.permute.xlu0 %1537  ;;  %v2357_v29 = vld [vmem:[%s4116_s9 + $0x220] sm:$0xff] }
 0x73a   : > { %v1857_v8 = vsel %vm1837_vm10, %v1793_v0, 0.0  ;;  %v2082_v49 = vsel %vm1837_vm10, %v2019_v33, 0.0  ;;  %v1794_v26 = vmul.f32 %v1740_v35, %v1686_v57  ;;  %v2020_v43 = vmul.f32 %v2354_v23, %v1686_v57  ;;  %v1540_v34 = vpop.permute.xlu1 %1539 }
 0x73b   : > { %v1856_v47 = vadd.f32 %v1855_v38, %v1854_v61  ;;  %v2081_v48 = vadd.f32 %v2080_v55, %v2079_v58  ;;  %v1687_v53 = vmax.f32 %v3396_v42, %v1538_v32  ;;  %v1688_v52 = vmax.f32 %v3400_v5, %v1540_v34  ;;  %v1743_v42 = vld [vmem:[%s4116_s9 + $0x70] sm:$0xff] }
 0x73c   : > { %v1859_v56 = vsel %vm1837_vm10, %v1794_v26, 0.0  ;;  %v2084_v54 = vsel %vm1837_vm10, %v2020_v43, 0.0  ;;  %v2359_v34 = vld [vmem:[%s4116_s9 + $0x230] sm:$0xff] }
 0x73d   : > { %v1858_v3 = vadd.f32 %v1857_v8, %v1856_v47  ;;  %v2083_v7 = vadd.f32 %v2082_v49, %v2081_v48  ;;  %v1795_v41 = vmul.f32 %v1741_v19, %v1687_v53  ;;  %v2021_v62 = vmul.f32 %v2355_v2, %v1687_v53  ;;  %v1542_v1 = vpop.permute.xlu0 %1541  ;;  %v1744_v49 = vld [vmem:[%s4116_s9 + $0x78] sm:$0xff]  ;;  %v1745_v2 = vld [vmem:[%s4116_s9 + $0x80] sm:$0xff] }
 0x73e   : > { %v1796_v35 = vmul.f32 %v1742_v40, %v1688_v52  ;;  %v2022_v23 = vmul.f32 %v2356_v50, %v1688_v52  ;;  %v1689_v5 = vmax.f32 %v3404_v46, %v1542_v1  ;;  %v1544_v0 = vpop.permute.xlu1 %1543  ;;  %v2358_v46 = vld [vmem:[%s4116_s9 + $0x228] sm:$0xff] }
 0x73f   : > { %v1860_v33 = vadd.f32 %v1859_v56, %v1858_v3  ;;  %v2085_v57 = vadd.f32 %v2084_v54, %v2083_v7  ;;  %v1861_v61 = vsel %vm1837_vm10, %v1795_v41, 0.0  ;;  %v2086_v58 = vsel %vm1837_vm10, %v2021_v62, 0.0  ;;  %v1746_v3 = vld [vmem:[%s4116_s9 + $0x88] sm:$0xff]  ;;  %v2360_v7 = vld [vmem:[%s4116_s9 + $0x238] sm:$0xff] }
 0x740   : > { %v1863_v38 = vsel %vm1837_vm10, %v1796_v35, 0.0  ;;  %v2088_v55 = vsel %vm1837_vm10, %v2022_v23, 0.0  ;;  %v1797_v32 = vmul.f32 %v1743_v42, %v1689_v5  ;;  %v2023_v8 = vmul.f32 %v2357_v29, %v1689_v5 }
 0x741   : > { %v1862_v26 = vadd.f32 %v1861_v61, %v1860_v33  ;;  %v2087_v43 = vadd.f32 %v2086_v58, %v2085_v57  ;;  %v1690_v19 = vmax.f32 %v3408_v6, %v1544_v0  ;;  %v1546_v47 = vpop.permute.xlu0 %1545  ;;  %v1747_v61 = vld [vmem:[%s4116_s9 + $0x90] sm:$0xff] }
 0x742   : > { %v1865_v48 = vsel %vm1837_vm10, %v1797_v32, 0.0  ;;  %v2090_v53 = vsel %vm1837_vm10, %v2023_v8, 0.0  ;;  %v1691_v40 = vmax.f32 %v3412_v51, %v1546_v47  ;;  %v1548_v50 = vpop.permute.xlu1 %1547  ;;  %v1748_v8 = vld [vmem:[%s4116_s9 + $0x98] sm:$0xff] }
 0x743   : > { %v1864_v52 = vadd.f32 %v1863_v38, %v1862_v26  ;;  %v2089_v56 = vadd.f32 %v2088_v55, %v2087_v43  ;;  %v1798_v54 = vmul.f32 %v1744_v49, %v1690_v19  ;;  %v2024_v6 = vmul.f32 %v2358_v46, %v1690_v19  ;;  %v2362_v49 = vld [vmem:[%s4116_s9 + $0x248] sm:$0xff] }
 0x744   : > { %v1799_v41 = vmul.f32 %v1745_v2, %v1691_v40  ;;  %v2025_v62 = vmul.f32 %v2359_v34, %v1691_v40  ;;  %v1692_v42 = vmax.f32 %v3416_v9, %v1548_v50  ;;  %v2361_v9 = vld [vmem:[%s4116_s9 + $0x240] sm:$0xff] }
 0x745   : > { %v1866_v29 = vadd.f32 %v1865_v48, %v1864_v52  ;;  %v2091_v1 = vadd.f32 %v2090_v53, %v2089_v56  ;;  %v1867_v51 = vsel %vm1837_vm10, %v1798_v54, 0.0  ;;  %v2092_v35 = vsel %vm1837_vm10, %v2024_v6, 0.0  ;;  %v1550_v23 = vpop.permute.xlu0 %1549  ;;  %v2363_v48 = vld [vmem:[%s4116_s9 + $0x250] sm:$0xff] }
 0x746   : > { %v1869_v5 = vsel %vm1837_vm10, %v1799_v41, 0.0  ;;  %v2094_v0 = vsel %vm1837_vm10, %v2025_v62, 0.0  ;;  %v1800_v33 = vmul.f32 %v1746_v3, %v1692_v42  ;;  %v2026_v57 = vmul.f32 %v2360_v7, %v1692_v42  ;;  %v1552_v58 = vpop.permute.xlu1 %1551 }
 0x747   : > { %v1868_v38 = vadd.f32 %v1867_v51, %v1866_v29  ;;  %v2093_v55 = vadd.f32 %v2092_v35, %v2091_v1  ;;  %v1693_v32 = vmax.f32 %v3420_v60, %v1550_v23  ;;  %v1694_v46 = vmax.f32 %v3424_v10, %v1552_v58  ;;  %v1749_v60 = vld [vmem:[%s4116_s9 + $0xa0] sm:$0xff]  ;;  %v1750_v29 = vld [vmem:[%s4116_s9 + $0xa8] sm:$0xff]  ;;  %v1751_v23 = vld [vmem:[%s4116_s9 + $0xb0] sm:$0xff] }
 0x748   : > { %v1871_v26 = vsel %vm1837_vm10, %v1800_v33, 0.0  ;;  %v2096_v43 = vsel %vm1837_vm10, %v2026_v57, 0.0 }
 0x749   : > { %v1870_v19 = vadd.f32 %v1869_v5, %v1868_v38  ;;  %v2095_v2 = vadd.f32 %v2094_v0, %v2093_v55  ;;  %v1801_v34 = vmul.f32 %v1747_v61, %v1693_v32  ;;  %v2027_v47 = vmul.f32 %v2361_v9, %v1693_v32  ;;  %v1554_v53 = vpop.permute.xlu0 %1553  ;;  %v2365_v5 = vld [vmem:[%s4116_s9 + $0x260] sm:$0xff]  ;;  %v1752_v32 = vld [vmem:[%s4116_s9 + $0xb8] sm:$0xff] }
 0x74a   : > { %v1802_v40 = vmul.f32 %v1748_v8, %v1694_v46  ;;  %v2028_v50 = vmul.f32 %v2362_v49, %v1694_v46  ;;  %v1695_v10 = vmax.f32 %v3428_v4, %v1554_v53  ;;  %v1556_v52 = vpop.permute.xlu1 %1555  ;;  %v2364_v4 = vld [vmem:[%s4116_s9 + $0x258] sm:$0xff]  ;;  %v2366_v8 = vld [vmem:[%s4116_s9 + $0x268] sm:$0xff] }
 0x74b   : > { %v1872_v56 = vadd.f32 %v1871_v26, %v1870_v19  ;;  %v2097_v54 = vadd.f32 %v2096_v43, %v2095_v2  ;;  %v1873_v6 = vsel %vm1837_vm10, %v1801_v34, 0.0  ;;  %v2098_v3 = vsel %vm1837_vm10, %v2027_v47, 0.0 }
 0x74c   : > { %v1875_v7 = vsel %vm1837_vm10, %v1802_v40, 0.0  ;;  %v2100_v41 = vsel %vm1837_vm10, %v2028_v50, 0.0  ;;  %v1803_v62 = vmul.f32 %v1749_v60, %v1695_v10  ;;  %v2029_v42 = vmul.f32 %v2363_v48, %v1695_v10  ;;  %v1753_v40 = vld [vmem:[%s4116_s9 + $0xc0] sm:$0xff] }
 0x74d   : > { %v1874_v1 = vadd.f32 %v1873_v6, %v1872_v56  ;;  %v2099_v51 = vadd.f32 %v2098_v3, %v2097_v54  ;;  %v1696_v35 = vmax.f32 %v3432_v13, %v1556_v52  ;;  %v1558_v0 = vpop.permute.xlu0 %1557  ;;  %v1754_v54 = vld [vmem:[%s4116_s9 + $0xc8] sm:$0xff]  ;;  %v2368_v6 = vld [vmem:[%s4116_s9 + $0x278] sm:$0xff] }
 0x74e   : > { %v1877_v33 = vsel %vm1837_vm10, %v1803_v62, 0.0  ;;  %v2102_v57 = vsel %vm1837_vm10, %v2029_v42, 0.0  ;;  %v1697_v61 = vmax.f32 %v3436_v12, %v1558_v0  ;;  %v1560_v9 = vpop.permute.xlu1 %1559 }
 0x74f   : > { %v1876_v58 = vadd.f32 %v1875_v7, %v1874_v1  ;;  %v2101_v38 = vadd.f32 %v2100_v41, %v2099_v51  ;;  %v1804_v55 = vmul.f32 %v1750_v29, %v1696_v35  ;;  %v2030_v13 = vmul.f32 %v2364_v4, %v1696_v35  ;;  %v2369_v1 = vld [vmem:[%s4116_s9 + $0x280] sm:$0xff] }
 0x750   : > { %v1805_v49 = vmul.f32 %v1751_v23, %v1697_v61  ;;  %v2031_v46 = vmul.f32 %v2365_v5, %v1697_v61  ;;  %v1698_v26 = vmax.f32 %v3440_v14, %v1560_v9  ;;  %v2367_v14 = vld [vmem:[%s4116_s9 + $0x270] sm:$0xff] }
 0x751   : > { %v1878_v43 = vadd.f32 %v1877_v33, %v1876_v58  ;;  %v2103_v19 = vadd.f32 %v2102_v57, %v2101_v38  ;;  %v1879_v12 = vsel %vm1837_vm10, %v1804_v55, 0.0  ;;  %v2104_v2 = vsel %vm1837_vm10, %v2030_v13, 0.0  ;;  %v1562_v34 = vpop.permute.xlu0 %1561  ;;  %v1756_v13 = vld [vmem:[%s4116_s9 + $0xd8] sm:$0xff] }
 0x752   : > { %v1881_v47 = vsel %vm1837_vm10, %v1805_v49, 0.0  ;;  %v2106_v60 = vsel %vm1837_vm10, %v2031_v46, 0.0  ;;  %v1806_v48 = vmul.f32 %v1752_v32, %v1698_v26  ;;  %v2032_v53 = vmul.f32 %v2366_v8, %v1698_v26  ;;  %v1564_v50 = vpop.permute.xlu1 %1563  ;;  %v1757_v46 = vld [vmem:[%s4116_s9 + $0xe0] sm:$0xff]  ;;  %v2371_v26 = vld [vmem:[%s4116_s9 + $0x290] sm:$0xff] }
 0x753   : > { %v1880_v10 = vadd.f32 %v1879_v12, %v1878_v43  ;;  %v2105_v52 = vadd.f32 %v2104_v2, %v2103_v19  ;;  %v1699_v56 = vmax.f32 %v3444_v20, %v1562_v34  ;;  %v1700_v3 = vmax.f32 %v3448_v17, %v1564_v50  ;;  %v1755_v20 = vld [vmem:[%s4116_s9 + $0xd0] sm:$0xff] }
 0x754   : > { %v1883_v7 = vsel %vm1837_vm10, %v1806_v48, 0.0  ;;  %v2108_v41 = vsel %vm1837_vm10, %v2032_v53, 0.0  ;;  %v1758_v53 = vld [vmem:[%s4116_s9 + $0xe8] sm:$0xff] }
 0x755   : > { %v1882_v62 = vadd.f32 %v1881_v47, %v1880_v10  ;;  %v2107_v42 = vadd.f32 %v2106_v60, %v2105_v52  ;;  %v1807_v29 = vmul.f32 %v1753_v40, %v1699_v56  ;;  %v2033_v4 = vmul.f32 %v2367_v14, %v1699_v56  ;;  %v1566_v51 = vpop.permute.xlu0 %1565  ;;  %v2372_v40 = vld [vmem:[%s4116_s9 + $0x298] sm:$0xff] }
 0x756   : > { %v1808_v35 = vmul.f32 %v1754_v54, %v1700_v3  ;;  %v2034_v23 = vmul.f32 %v2368_v6, %v1700_v3  ;;  %v1701_v17 = vmax.f32 %v3452_v28, %v1566_v51  ;;  %v1568_v5 = vpop.permute.xlu1 %1567  ;;  %v2370_v28 = vld [vmem:[%s4116_s9 + $0x288] sm:$0xff]  ;;  %v1760_v51 = vld [vmem:[%s4116_s9 + $0xf8] sm:$0xff] }
 0x757   : > { %v1884_v0 = vadd.f32 %v1883_v7, %v1882_v62  ;;  %v2109_v33 = vadd.f32 %v2108_v41, %v2107_v42  ;;  %v1885_v57 = vsel %vm1837_vm10, %v1807_v29, 0.0  ;;  %v2110_v61 = vsel %vm1837_vm10, %v2033_v4, 0.0  ;;  %v1759_v42 = vld [vmem:[%s4116_s9 + $0xf0] sm:$0xff] }
 0x758   : > { %v1887_v9 = vsel %vm1837_vm10, %v1808_v35, 0.0  ;;  %v2112_v58 = vsel %vm1837_vm10, %v2034_v23, 0.0  ;;  %v1809_v38 = vmul.f32 %v1755_v20, %v1701_v17  ;;  %v2035_v55 = vmul.f32 %v2369_v1, %v1701_v17  ;;  %v2374_v35 = vld [vmem:[%s4116_s9 + $0x2a8] sm:$0xff] }
 0x759   : > { %v1886_v32 = vadd.f32 %v1885_v57, %v1884_v0  ;;  %v2111_v8 = vadd.f32 %v2110_v61, %v2109_v33  ;;  %v1702_v49 = vmax.f32 %v3456_v18, %v1568_v5  ;;  %v1570_v43 = vpop.permute.xlu0 %1569 }
 0x75a   : > { %v1889_v19 = vsel %vm1837_vm10, %v1809_v38, 0.0  ;;  %v2114_v12 = vsel %vm1837_vm10, %v2035_v55, 0.0  ;;  %v1703_v2 = vmax.f32 %v3460_v36, %v1570_v43  ;;  %v1572_v34 = vpop.permute.xlu1 %1571 }
 0x75b   : > { %v1888_v47 = vadd.f32 %v1887_v9, %v1886_v32  ;;  %v2113_v60 = vadd.f32 %v2112_v58, %v2111_v8  ;;  %v1810_v48 = vmul.f32 %v1756_v13, %v1702_v49  ;;  %v2036_v18 = vmul.f32 %v2370_v28, %v1702_v49  ;;  %v2375_v9 = vld [vmem:[%s4116_s9 + $0x2b0] sm:$0xff] }
 0x75c   : > { %v1811_v14 = vmul.f32 %v1757_v46, %v1703_v2  ;;  %v2037_v50 = vmul.f32 %v2371_v26, %v1703_v2  ;;  %v1704_v10 = vmax.f32 %v3464_v21, %v1572_v34  ;;  %v2373_v21 = vld [vmem:[%s4116_s9 + $0x2a0] sm:$0xff] }
 0x75d   : > { %v1890_v52 = vadd.f32 %v1889_v19, %v1888_v47  ;;  %v2115_v56 = vadd.f32 %v2114_v12, %v2113_v60  ;;  %v1891_v36 = vsel %vm1837_vm10, %v1810_v48, 0.0  ;;  %v2116_v54 = vsel %vm1837_vm10, %v2036_v18, 0.0  ;;  %v1574_v6 = vpop.permute.xlu0 %1573  ;;  %v1762_v12 = vld [vmem:[%s4116_s9 + $0x108] sm:$0xff]  ;;  %v1763_v60 = vld [vmem:[%s4116_s9 + $0x110] sm:$0xff]  ;;  %v2377_v48 = vld [vmem:[%s4116_s9 + $0x2c0] sm:$0xff] }
 0x75e   : > { %v1893_v3 = vsel %vm1837_vm10, %v1811_v14, 0.0  ;;  %v2118_v7 = vsel %vm1837_vm10, %v2037_v50, 0.0  ;;  %v1812_v41 = vmul.f32 %v1758_v53, %v1704_v10  ;;  %v2038_v62 = vmul.f32 %v2372_v40, %v1704_v10  ;;  %v1576_v29 = vpop.permute.xlu1 %1575 }
 0x75f   : > { %v1892_v4 = vadd.f32 %v1891_v36, %v1890_v52  ;;  %v2117_v20 = vadd.f32 %v2116_v54, %v2115_v56  ;;  %v1705_v1 = vmax.f32 %v3468_v44, %v1574_v6  ;;  %v1706_v23 = vmax.f32 %v3472_v22, %v1576_v29  ;;  %v1761_v44 = vld [vmem:[%s4116_s9 + $0x100] sm:$0xff]  ;;  %v1764_v36 = vld [vmem:[%s4116_s9 + $0x118] sm:$0xff]  ;;  %v2378_v54 = vld [vmem:[%s4116_s9 + $0x2c8] sm:$0xff] }
 0x760   : > { %v1895_v17 = vsel %vm1837_vm10, %v1812_v41, 0.0  ;;  %v2120_v5 = vsel %vm1837_vm10, %v2038_v62, 0.0 }
 0x761   : > { %v1894_v0 = vadd.f32 %v1893_v3, %v1892_v4  ;;  %v2119_v33 = vadd.f32 %v2118_v7, %v2117_v20  ;;  %v1813_v57 = vmul.f32 %v1759_v42, %v1705_v1  ;;  %v2039_v61 = vmul.f32 %v2373_v21, %v1705_v1  ;;  %v1578_v58 = vpop.permute.xlu0 %1577 }
 0x762   : > { %v1814_v38 = vmul.f32 %v1760_v51, %v1706_v23  ;;  %v2040_v55 = vmul.f32 %v2374_v35, %v1706_v23  ;;  %v1707_v22 = vmax.f32 %v3476_v25, %v1578_v58  ;;  %v1580_v13 = vpop.permute.xlu1 %1579  ;;  %v2376_v25 = vld [vmem:[%s4116_s9 + $0x2b8] sm:$0xff]  ;;  %v1765_v51 = vld [vmem:[%s4116_s9 + $0x120] sm:$0xff] }
 0x763   : > { %v1896_v28 = vadd.f32 %v1895_v17, %v1894_v0  ;;  %v2121_v32 = vadd.f32 %v2120_v5, %v2119_v33  ;;  %v1897_v8 = vsel %vm1837_vm10, %v1813_v57, 0.0  ;;  %v2122_v49 = vsel %vm1837_vm10, %v2039_v61, 0.0  ;;  %v1766_v0 = vld [vmem:[%s4116_s9 + $0x128] sm:$0xff]  ;;  %v2380_v33 = vld [vmem:[%s4116_s9 + $0x2d8] sm:$0xff] }
 0x764   : > { %v1899_v46 = vsel %vm1837_vm10, %v1814_v38, 0.0  ;;  %v2124_v26 = vsel %vm1837_vm10, %v2040_v55, 0.0  ;;  %v1815_v43 = vmul.f32 %v1761_v44, %v1707_v22  ;;  %v2041_v19 = vmul.f32 %v2375_v9, %v1707_v22  ;;  %v2381_v22 = vld [vmem:[%s4116_s9 + $0x2e0] sm:$0xff] }
 0x765   : > { %v1898_v2 = vadd.f32 %v1897_v8, %v1896_v28  ;;  %v2123_v34 = vadd.f32 %v2122_v49, %v2121_v32  ;;  %v1708_v47 = vmax.f32 %v3480_v16, %v1580_v13  ;;  %v1582_v18 = vpop.permute.xlu0 %1581 }
 0x766   : > { %v1901_v53 = vsel %vm1837_vm10, %v1815_v43, 0.0  ;;  %v2126_v40 = vsel %vm1837_vm10, %v2041_v19, 0.0  ;;  %v1709_v14 = vmax.f32 %v3484_v30, %v1582_v18  ;;  %v1584_v50 = vpop.permute.xlu1 %1583  ;;  %v1769_v18 = vld [vmem:[%s4116_s9 + $0x140] sm:$0xff] }
 0x767   : > { %v1900_v10 = vadd.f32 %v1899_v46, %v1898_v2  ;;  %v2125_v52 = vadd.f32 %v2124_v26, %v2123_v34  ;;  %v1816_v56 = vmul.f32 %v1762_v12, %v1708_v47  ;;  %v2042_v16 = vmul.f32 %v2376_v25, %v1708_v47  ;;  %v1768_v34 = vld [vmem:[%s4116_s9 + $0x138] sm:$0xff] }
 0x768   : > { %v1817_v6 = vmul.f32 %v1763_v60, %v1709_v14  ;;  %v2043_v3 = vmul.f32 %v2377_v48, %v1709_v14  ;;  %v1710_v7 = vmax.f32 %v3488_v24, %v1584_v50  ;;  %v2379_v24 = vld [vmem:[%s4116_s9 + $0x2d0] sm:$0xff] }
 0x769   : > { %v1902_v41 = vadd.f32 %v1901_v53, %v1900_v10  ;;  %v2127_v62 = vadd.f32 %v2126_v40, %v2125_v52  ;;  %v1903_v30 = vsel %vm1837_vm10, %v1816_v56, 0.0  ;;  %v2128_v42 = vsel %vm1837_vm10, %v2042_v16, 0.0  ;;  %v1586_v21 = vpop.permute.xlu0 %1585  ;;  %v2383_v53 = vld [vmem:[%s4116_s9 + $0x2f0] sm:$0xff] }
 0x76a   : > { %v1905_v29 = vsel %vm1837_vm10, %v1817_v6, 0.0  ;;  %v2130_v4 = vsel %vm1837_vm10, %v2043_v3, 0.0  ;;  %v1818_v20 = vmul.f32 %v1764_v36, %v1710_v7  ;;  %v2044_v1 = vmul.f32 %v2378_v54, %v1710_v7  ;;  %v1588_v35 = vpop.permute.xlu1 %1587  ;;  %v1770_v54 = vld [vmem:[%s4116_s9 + $0x148] sm:$0xff]  ;;  %v2384_v6 = vld [vmem:[%s4116_s9 + $0x2f8] sm:$0xff] }
 0x76b   : > { %v1904_v23 = vadd.f32 %v1903_v30, %v1902_v41  ;;  %v2129_v17 = vadd.f32 %v2128_v42, %v2127_v62  ;;  %v1711_v5 = vmax.f32 %v3492_v37, %v1586_v21  ;;  %v1712_v57 = vmax.f32 %v3496_v15, %v1588_v35  ;;  %v1767_v37 = vld [vmem:[%s4116_s9 + $0x130] sm:$0xff] }
 0x76c   : > { %v1907_v61 = vsel %vm1837_vm10, %v1818_v20, 0.0  ;;  %v2132_v44 = vsel %vm1837_vm10, %v2044_v1, 0.0 }
 0x76d   : > { %v1906_v9 = vadd.f32 %v1905_v29, %v1904_v23  ;;  %v2131_v58 = vadd.f32 %v2130_v4, %v2129_v17  ;;  %v1819_v38 = vmul.f32 %v1765_v51, %v1711_v5  ;;  %v2045_v55 = vmul.f32 %v2379_v24, %v1711_v5  ;;  %v1590_v13 = vpop.permute.xlu0 %1589  ;;  %v1771_v51 = vld [vmem:[%s4116_s9 + $0x150] sm:$0xff]  ;;  %v1772_v5 = vld [vmem:[%s4116_s9 + $0x158] sm:$0xff] }
 0x76e   : > { %v1820_v28 = vmul.f32 %v1766_v0, %v1712_v57  ;;  %v2046_v32 = vmul.f32 %v2380_v33, %v1712_v57  ;;  %v1713_v15 = vmax.f32 %v3500_v45, %v1590_v13  ;;  %v1592_v8 = vpop.permute.xlu1 %1591  ;;  %v2382_v45 = vld [vmem:[%s4116_s9 + $0x2e8] sm:$0xff] }
 0x76f   : > { %v1908_v49 = vadd.f32 %v1907_v61, %v1906_v9  ;;  %v2133_v46 = vadd.f32 %v2132_v44, %v2131_v58  ;;  %v1909_v26 = vsel %vm1837_vm10, %v1819_v38, 0.0  ;;  %v2134_v43 = vsel %vm1837_vm10, %v2045_v55, 0.0  ;;  %v2386_v0 = vld [vmem:[%s4116_s9 + $0x308] sm:$0xff]  ;;  %v2387_v55 = vld [vmem:[%s4116_s9 + $0x310] sm:$0xff] }
 0x770   : > { %v1911_v19 = vsel %vm1837_vm10, %v1820_v28, 0.0  ;;  %v2136_v12 = vsel %vm1837_vm10, %v2046_v32, 0.0  ;;  %v1821_v25 = vmul.f32 %v1767_v37, %v1713_v15  ;;  %v2047_v2 = vmul.f32 %v2381_v22, %v1713_v15 }
 0x771   : > { %v1910_v47 = vadd.f32 %v1909_v26, %v1908_v49  ;;  %v2135_v60 = vadd.f32 %v2134_v43, %v2133_v46  ;;  %v1714_v48 = vmax.f32 %v3504_v31, %v1592_v8  ;;  %v1594_v40 = vpop.permute.xlu0 %1593 }
 0x772   : > { %v1913_v14 = vsel %vm1837_vm10, %v1821_v25, 0.0  ;;  %v2138_v50 = vsel %vm1837_vm10, %v2047_v2, 0.0  ;;  %v1715_v10 = vmax.f32 %v3508_v59, %v1594_v40  ;;  %v1596_v52 = vpop.permute.xlu1 %1595  ;;  %v4154_v40 = vld [vmem:[#allocation11_spill] sm:$0xff] }
 0x773   : > { %v1912_v56 = vadd.f32 %v1911_v19, %v1910_v47  ;;  %v2137_v16 = vadd.f32 %v2136_v12, %v2135_v60  ;;  %v1822_v36 = vmul.f32 %v1768_v34, %v1714_v48  ;;  %v2048_v31 = vmul.f32 %v2382_v45, %v1714_v48  ;;  %v1774_v12 = vld [vmem:[%s4116_s9 + $0x168] sm:$0xff]  ;;  %v1775_v47 = vld [vmem:[%s4116_s9 + $0x170] sm:$0xff]  ;;  %v2389_v60 = vld [vmem:[%s4116_s9 + $0x320] sm:$0xff] }
 0x774   : > { %v1823_v3 = vmul.f32 %v1769_v18, %v1715_v10  ;;  %v2049_v7 = vmul.f32 %v2383_v53, %v1715_v10  ;;  %v1716_v41 = vmax.f32 %v3512_v39, %v1596_v52  ;;  %v2385_v39 = vld [vmem:[%s4116_s9 + $0x300] sm:$0xff]  ;;  %v4153_v34 = vld [vmem:[#allocation10_spill] sm:$0xff] }
 0x775   : > { %v1914_v62 = vadd.f32 %v1913_v14, %v1912_v56  ;;  %v2139_v30 = vadd.f32 %v2138_v50, %v2137_v16  ;;  %v1915_v59 = vsel %vm1837_vm10, %v1822_v36, 0.0  ;;  %v2140_v42 = vsel %vm1837_vm10, %v2048_v31, 0.0  ;;  %v1598_v21 = vpop.permute.xlu0 %1597  ;;  %v1776_v36 = vld [vmem:[%s4116_s9 + $0x178] sm:$0xff]  ;;  %v2390_v31 = vld [vmem:[%s4116_s9 + $0x328] sm:$0xff] }
 0x776   : > { %v1917_v29 = vsel %vm1837_vm10, %v1823_v3, 0.0  ;;  %v2142_v4 = vsel %vm1837_vm10, %v2049_v7, 0.0  ;;  %v1824_v20 = vmul.f32 %v1770_v54, %v1716_v41  ;;  %v2050_v1 = vmul.f32 %v2384_v6, %v1716_v41  ;;  %v1600_v24 = vpop.permute.xlu1 %1599  ;;  %v4155_v3 = vld [vmem:[#allocation12_spill] sm:$0xff] }
 0x777   : > { %v1916_v35 = vadd.f32 %v1915_v59, %v1914_v62  ;;  %v2141_v23 = vadd.f32 %v2140_v42, %v2139_v30  ;;  %v1717_v17 = vmax.f32 %v3516_v11, %v1598_v21  ;;  %v1718_v33 = vmax.f32 %v3520_v63, %v1600_v24  ;;  %v1773_v11 = vld [vmem:[%s4116_s9 + $0x160] sm:$0xff] }
 0x778   : > { %v1919_v57 = vsel %vm1837_vm10, %v1824_v20, 0.0  ;;  %v2144_v61 = vsel %vm1837_vm10, %v2050_v1, 0.0  ;;  %v1777_v1 = vld [vmem:[%s4116_s9 + $0x180] sm:$0xff] }
 0x779   : > { %v1918_v44 = vadd.f32 %v1917_v29, %v1916_v35  ;;  %v2143_v9 = vadd.f32 %v2142_v4, %v2141_v23  ;;  %v1825_v58 = vmul.f32 %v1771_v51, %v1717_v17  ;;  %v2051_v38 = vmul.f32 %v2385_v39, %v1717_v17  ;;  %v1602_v37 = vpop.permute.xlu0 %1601  ;;  %v2391_v51 = vld [vmem:[%s4116_s9 + $0x330] sm:$0xff]  ;;  %v4156_v23 = vld [vmem:[#allocation13_spill] sm:$0xff] }
 0x77a   : > { %v1826_v22 = vmul.f32 %v1772_v5, %v1718_v33  ;;  %v2052_v13 = vmul.f32 %v2386_v0, %v1718_v33  ;;  %v1719_v63 = vmax.f32 %v3524_v27, %v1602_v37  ;;  %v1604_v28 = vpop.permute.xlu1 %1603  ;;  %v2388_v27 = vld [vmem:[%s4116_s9 + $0x318] sm:$0xff]  ;;  %v1778_v5 = vld [vmem:[%s4116_s9 + $0x188] sm:$0xff]  ;;  %v2393_v37 = vld [vmem:[%s4116_s9 + $0x340] sm:$0xff] }
 0x77b   : > { %v1920_v32 = vadd.f32 %v1919_v57, %v1918_v44  ;;  %v2145_v15 = vadd.f32 %v2144_v61, %v2143_v9  ;;  %v1921_v8 = vsel %vm1837_vm10, %v1825_v58, 0.0  ;;  %v2146_v49 = vsel %vm1837_vm10, %v2051_v38, 0.0  ;;  %v2392_v0 = vld [vmem:[%s4116_s9 + $0x338] sm:$0xff]  ;;  %v4157_v33 = vld [vmem:[#allocation14_spill] sm:$0xff] }
 0x77c   : > { %v1923_v46 = vsel %vm1837_vm10, %v1826_v22, 0.0  ;;  %v2148_v26 = vsel %vm1837_vm10, %v2052_v13, 0.0  ;;  %v1827_v43 = vmul.f32 %v1773_v11, %v1719_v63  ;;  %v2053_v19 = vmul.f32 %v2387_v55, %v1719_v63  ;;  %v1779_v55 = vld [vmem:[%s4116_s9 + $0x190] sm:$0xff] }
 0x77d   : > { %v1922_v25 = vadd.f32 %v1921_v8, %v1920_v32  ;;  %v2147_v2 = vadd.f32 %v2146_v49, %v2145_v15  ;;  %v1720_v45 = vmax.f32 %v4153_v34, %v1604_v28  ;;  %v1606_v48 = vpop.permute.xlu0 %1605  ;;  %v4158_v28 = vld [vmem:[#allocation15_spill] sm:$0xff] }
 0x77e   : > { %v1925_v18 = vsel %vm1837_vm10, %v1827_v43, 0.0  ;;  %v2150_v53 = vsel %vm1837_vm10, %v2053_v19, 0.0  ;;  %v1721_v14 = vmax.f32 %v4154_v40, %v1606_v48  ;;  %v1608_v50 = vpop.permute.xlu1 %1607  ;;  %v1781_v48 = vld [vmem:[%s4116_s9 + $0x1a0] sm:$0xff] }
 0x77f   : > { %v1924_v10 = vadd.f32 %v1923_v46, %v1922_v25  ;;  %v2149_v52 = vadd.f32 %v2148_v26, %v2147_v2  ;;  %v1828_v56 = vmul.f32 %v1774_v12, %v1720_v45  ;;  %v2054_v16 = vmul.f32 %v2388_v27, %v1720_v45  ;;  %v1780_v25 = vld [vmem:[%s4116_s9 + $0x198] sm:$0xff]  ;;  %v2394_v2 = vld [vmem:[%s4116_s9 + $0x348] sm:$0xff] }
 0x780   : > { %v1829_v54 = vmul.f32 %v1775_v47, %v1721_v14  ;;  %v2055_v6 = vmul.f32 %v2389_v60, %v1721_v14  ;;  %v1722_v7 = vmax.f32 %v4155_v3, %v1608_v50  ;;  %v4159_v47 = vld [vmem:[#allocation16_spill] sm:$0xff]  ;;  %v4160_v50 = vld [vmem:[#allocation17_spill] sm:$0xff] }
 0x781   : > { %v1926_v41 = vadd.f32 %v1925_v18, %v1924_v10  ;;  %v2151_v62 = vadd.f32 %v2150_v53, %v2149_v52  ;;  %v1927_v30 = vsel %vm1837_vm10, %v1828_v56, 0.0  ;;  %v2152_v59 = vsel %vm1837_vm10, %v2054_v16, 0.0  ;;  %v1610_v42 = vpop.permute.xlu0 %1609  ;;  %v2395_v18 = vld [vmem:[%s4116_s9 + $0x350] sm:$0xff] }
 0x782   : > { %v1929_v21 = vsel %vm1837_vm10, %v1829_v54, 0.0  ;;  %v2154_v29 = vsel %vm1837_vm10, %v2055_v6, 0.0  ;;  %v1830_v4 = vmul.f32 %v1776_v36, %v1722_v7  ;;  %v2056_v20 = vmul.f32 %v2390_v31, %v1722_v7  ;;  %v1612_v39 = vpop.permute.xlu1 %1611  ;;  %v1782_v54 = vld [vmem:[%s4116_s9 + $0x1a8] sm:$0xff]  ;;  %v2396_v6 = vld [vmem:[%s4116_s9 + $0x358] sm:$0xff] }
 0x783   : > { %v1928_v24 = vadd.f32 %v1927_v30, %v1926_v41  ;;  %v2153_v35 = vadd.f32 %v2152_v59, %v2151_v62  ;;  %v1723_v17 = vmax.f32 %v4156_v23, %v1610_v42  ;;  %v1724_v57 = vmax.f32 %v4157_v33, %v1612_v39  ;;  %v4161_v41 = vld [vmem:[#allocation18_spill] sm:$0xff] }
 0x784   : > { %v1931_v61 = vsel %vm1837_vm10, %v1830_v4, 0.0  ;;  %v2156_v44 = vsel %vm1837_vm10, %v2056_v20, 0.0 }
 0x785   : > { %v1930_v9 = vadd.f32 %v1929_v21, %v1928_v24  ;;  %v2155_v58 = vadd.f32 %v2154_v29, %v2153_v35  ;;  %v1831_v38 = vmul.f32 %v1777_v1, %v1723_v17  ;;  %v2057_v11 = vmul.f32 %v2391_v51, %v1723_v17  ;;  %v1614_v22 = vpop.permute.xlu0 %1613 }
 0x786   : > { %v1832_v13 = vmul.f32 %v1778_v5, %v1724_v57  ;;  %v2058_v63 = vmul.f32 %v2392_v0, %v1724_v57  ;;  %v1725_v32 = vmax.f32 %v4158_v28, %v1614_v22  ;;  %v1616_v15 = vpop.permute.xlu1 %1615 }
 0x787   : > { %v1932_v8 = vadd.f32 %v1931_v61, %v1930_v9  ;;  %v2157_v49 = vadd.f32 %v2156_v44, %v2155_v58  ;;  %v1933_v46 = vsel %vm1837_vm10, %v1831_v38, 0.0  ;;  %v2158_v26 = vsel %vm1837_vm10, %v2057_v11, 0.0 }
 0x788   : > { %v1935_v43 = vsel %vm1837_vm10, %v1832_v13, 0.0  ;;  %v2160_v19 = vsel %vm1837_vm10, %v2058_v63, 0.0  ;;  %v1833_v12 = vmul.f32 %v1779_v55, %v1725_v32  ;;  %v2059_v27 = vmul.f32 %v2393_v37, %v1725_v32 }
 0x789   : > { %v1934_v34 = vadd.f32 %v1933_v46, %v1932_v8  ;;  %v2159_v45 = vadd.f32 %v2158_v26, %v2157_v49  ;;  %v1726_v60 = vmax.f32 %v4159_v47, %v1616_v15  ;;  %v1618_v53 = vpop.permute.xlu0 %1617  ;;  %v2181_v8 = vld [vmem:[%s4117_s10] sm:$0x1] }
 0x78a   : > { %v1937_v40 = vsel %vm1837_vm10, %v1833_v12, 0.0  ;;  %v2162_v14 = vsel %vm1837_vm10, %v2059_v27, 0.0  ;;  %v1727_v10 = vmax.f32 %v4160_v50, %v1618_v53  ;;  %v1620_v52 = vpop.permute.xlu1 %1619 }
 0x78b   : > { %v1936_v56 = vadd.f32 %v1935_v43, %v1934_v34  ;;  %v2161_v16 = vadd.f32 %v2160_v19, %v2159_v45  ;;  %v1834_v36 = vmul.f32 %v1780_v25, %v1726_v60  ;;  %v2060_v31 = vmul.f32 %v2394_v2, %v1726_v60 }
 0x78c   : > { %v1835_v3 = vmul.f32 %v1781_v48, %v1727_v10  ;;  %v2061_v7 = vmul.f32 %v2395_v18, %v1727_v10  ;;  %v1728_v62 = vmax.f32 %v4161_v41, %v1620_v52 }
 0x78d   : > { %v1938_v30 = vadd.f32 %v1937_v40, %v1936_v56  ;;  %v2163_v59 = vadd.f32 %v2162_v14, %v2161_v16  ;;  %v1939_v42 = vsel %vm1837_vm10, %v1834_v36, 0.0  ;;  %v2164_v21 = vsel %vm1837_vm10, %v2060_v31, 0.0 }
 0x78e   : > { %v1941_v29 = vsel %vm1837_vm10, %v1835_v3, 0.0  ;;  %v2166_v4 = vsel %vm1837_vm10, %v2061_v7, 0.0  ;;  %v1836_v20 = vmul.f32 %v1782_v54, %v1728_v62  ;;  %v2062_v1 = vmul.f32 %v2396_v6, %v1728_v62 }
 0x78f   : > { %v1940_v51 = vadd.f32 %v1939_v42, %v1938_v30  ;;  %v2165_v39 = vadd.f32 %v2164_v21, %v2163_v59 }
 0x790   : > { %v2168_v24 = vsel %vm1837_vm10, %v2062_v1, 0.0  ;;  %v1943_v35 = vsel %vm1837_vm10, %v1836_v20, 0.0 }
 0x791   : > { %v2167_v23 = vadd.f32 %v2166_v4, %v2165_v39  ;;  %v1942_v17 = vadd.f32 %v1941_v29, %v1940_v51 }
 0x793   : > { %v2169_v5 = vadd.f32 %v2168_v24, %v2167_v23  ;;  %v1944_v0 = vadd.f32 %v1943_v35, %v1942_v17 }
 0x795   : > { %v2170_v33 = vsel %vm1837_vm10, %v2169_v5, 0.0  ;;  %v1945_v57 = vsel %vm1837_vm10, %v1944_v0, 0.0 }
 0x796   : > { %2171 = vadd.xlane.f32.xlu1 %v2170_v33  ;;  %1946 = vadd.xlane.f32.xlu0 %v1945_v57 }
 0x823   : > { %v2172_v61 = vpop.xlane.xlu1 %2171  ;;  %v1947_v44 = vpop.xlane.xlu0 %1946 }
 0x824   : > { %v2173_v9 = vrot.slane %v2172_v61, 4  ;;  %v1948_v58 = vrot.slane %v1947_v44, 4 }
 0x826   : > { %v2174_v38 = vadd.f32 %v2173_v9, %v2172_v61  ;;  %v1949_v11 = vadd.f32 %v1948_v58, %v1947_v44 }
 0x828   : > { %v2175_v55 = vrot.slane %v2174_v38, 2  ;;  %v1950_v37 = vrot.slane %v1949_v11, 2 }
 0x82a   : > { %v2176_v22 = vadd.f32 %v2175_v55, %v2174_v38  ;;  %v1951_v13 = vadd.f32 %v1950_v37, %v1949_v11 }
 0x82c   : > { %v2177_v63 = vrot.slane %v2176_v22, 1  ;;  %v1952_v28 = vrot.slane %v1951_v13, 1 }
 0x82e   : > { %v2178_v32 = vadd.f32 %v2177_v63, %v2176_v22  ;;  %v1953_v15 = vadd.f32 %v1952_v28, %v1951_v13 }
 0x830   : > { %v2180_v49 = vsel %vm2179_vm11, %v1953_v15, %v2178_v32 }
 0x831   : > { %v2182_v46 = vadd.f32 %v2181_v8, %v2180_v49 }
 0x833   : > { %2184 = vst.msk [vmem:[%s2913_s16] sm:$0x1] %vm2183_vm12, %v2182_v46 }
 0x834   : > { %2686 = shalt.err (!%p2683_p9)
}
 0x835   : > { %s2687_s29 = scalar_lea.hbm %s4062_s13, 16  ;;  %s2691_s14 = scalar_lea.hbm %s4118_s11, 32 }
 0x836   : > { %p2688_p10 = scmp.ne.s32.totalorder %s4062_s13, %s2687_s29  ;;  %p2692_p13 = scmp.lt.u32.totalorder %s4062_s13, %s4118_s11 }
 0x837   : > { %p2693_p0 = scmp.lt.u32.totalorder %s2691_s14, %s2687_s29  ;;  %p2695_p2 = scmp.lt.u32.totalorder %s2687_s29, %s4062_s13 }
 0x838   : > { %p2689_p11 = pnand %p2688_p10, %p2893_p5 }
 0x839   : > { %p2694_p1 = por %p2693_p0, %p2692_p13 }
 0x83a   : > { %p2690_p12 = pneg %p2689_p11 }
 0x83b   : > { %p2696_p3 = por %p2695_p2, %p2694_p1 }
 0x83d   : > { %p2697_p4 = pnand %p2696_p3, %p2690_p12 }
 0x83f   : > { %2700 = shalt.err (!%p2697_p4)
}
 0x840   : > { %2573 = dma.vmem_to_hbm [thread:$0]  (%p2893_p5), %s4064_s12, 16, %s4062_s13, %s2186_s22  }
 0x841 PF: > { %p2579_p7 = scmp.ge.s32.totalorder %s2751_s20, 2  ;;  %s2210_s0 = sand.u32 1, %s2739_s17  }
 0x842   : > { %s2211_s24 = scalar_lea.sflag [#allocation8], %s2210_s0 }
 0x843   : > { %p2576_p8 = pnand %p2579_p7, %p2897_p6 }
 0x845   : > { %2734 = dma.done.wait (!%p2576_p8), %s2211_s24, 16  }
 0x846   : > { %2736 = vsyncadd (!%p2576_p8), %s2211_s24, 4294967280  ;;  %p21_p9 = scmp.ge.s32.totalorder %s2880_s23, 4   ;;  %s4162_s17 = smov %s2743_s18 }
 0x847   : > { %s4163_s18 = smov %s2747_s19  ;;  %s4164_s19 = smov %s2891_s26 }
 0x848   : > { %s4165_s20 = smov %s2880_s23  ;;  %23 = sbr.rel (!%p21_p9) target bundleno = 5 (0x5), region = 188 }
 0x84f   :  { %2215 = vsyncpa [#allocation8], 1 }
 0x850   :  { %2217 = vsyncpa [#allocation8 + $0x1], 1 }

</bundles_post_ra>
